<compile_context>
chip_gen: v7x
topology: tpu7x:2x2x1
jax: 0.10.0
libtpu: 0.0.40
codegen_flags: <defaults>
</compile_context>

<pallas_src>
import functools

import jax
import jax.numpy as jnp
from jax import lax
from jax.experimental import pallas as pl
from jax.experimental.pallas import tpu as pltpu


# ---------------- single fused Pallas kernel ----------------

def _netresdeep_kernel(x_ref, w1_ref, b1_ref, wr_ref, gamma_ref, beta_ref,
                       m1_ref, m2_ref, s1_ref, s2_ref,
                       fc1w_ref, fc1b_ref, fc2w_ref, fc2b_ref,
                       out_ref, xfc_ref,
                       *, n, h, w, cr, n_res_blocks):
    f32 = jnp.float32
    h2, w2 = h // 2, w // 2
    h4, w4 = h // 4, w // 4
    L1 = n * h * w          # lanes, conv1 stage
    L2 = n * h2 * w2        # lanes, res stage
    sp = h4 * w4            # per-sample spatial positions after 2nd pool

    def shifted(v, off, lanes):
        # shifted[:, j] == v[:, j + off] (cyclic).  Out-of-range / cross-sample lanes are
        # zeroed by the precomputed border masks, so the wrap-around is harmless.
        return v if off == 0 else pltpu.roll(v, (-off) % lanes, 1)

    offs1 = [dy * w + dx for dy in (-1, 0, 1) for dx in (-1, 0, 1)]
    offs2 = [dy * w2 + dx for dy in (-1, 0, 1) for dx in (-1, 0, 1)]
    m1_rows = [m1_ref[t:t + 1, :] for t in range(9)]      # (1, L1) border masks, loaded once
    m2_rows = [m2_ref[t:t + 1, :] for t in range(9)]      # (1, L2), hoisted out of the res loop

    # -------- conv1 (3x3, pad=1) + bias + relu : ONE (9*cr, cin) x (cin, L1) matmul --------
    btap = jnp.dot(w1_ref[...], x_ref[...], preferred_element_type=f32)    # (9*cr, L1)
    acc = jnp.zeros((cr, L1), f32)
    for t in range(9):
        acc = acc + m1_rows[t] * shifted(btap[t * cr:(t + 1) * cr, :], offs1[t], L1)
    c1 = jnp.maximum(acc + b1_ref[...], 0.0)                               # (cr, L1)

    # -------- max_pool2d(2): 3 rolls + max, then one 0/1 selection matmul (compaction) --------
    pm = jnp.maximum(jnp.maximum(c1, shifted(c1, 1, L1)),
                     jnp.maximum(shifted(c1, w, L1), shifted(c1, w + 1, L1)))
    a = jnp.dot(pm, s1_ref[...], preferred_element_type=f32)               # (cr, L2)

    # -------- n_res_blocks x shared-weight ResBlock (fully unrolled, hoisted constants) --------
    wr = wr_ref[...]
    gamma = gamma_ref[...]
    beta = beta_ref[...]
    inv_cnt = 1.0 / float(L2)          # BatchNorm2d stats over (N, H, W) == all L2 lanes per row
    for _ in range(n_res_blocks):
        rtap = jnp.dot(wr, a, preferred_element_type=f32)                  # (9*cr, L2)
        conv = jnp.zeros((cr, L2), f32)
        for t in range(9):
            conv = conv + m2_rows[t] * shifted(rtap[t * cr:(t + 1) * cr, :], offs2[t], L2)
        mean = jnp.sum(conv, axis=1, keepdims=True) * inv_cnt              # (cr, 1)
        d = conv - mean
        var = jnp.sum(d * d, axis=1, keepdims=True) * inv_cnt              # biased var, eps=1e-5
        y = gamma * (d * lax.rsqrt(var + 1e-5)) + beta
        a = jnp.maximum(y, 0.0) + a
    # TODO(synk): BatchNorm running_mean/running_var updates (training-mode side effect) are
    # not materialized; only the forward math is reproduced.

    # -------- second max_pool2d(2): rolls + max + selection matmul --------
    pm2 = jnp.maximum(jnp.maximum(a, shifted(a, 1, L2)),
                      jnp.maximum(shifted(a, w2, L2), shifted(a, w2 + 1, L2)))
    p2 = jnp.dot(pm2, s2_ref[...], preferred_element_type=f32)             # (cr, n*h4*w4)

    # -------- flatten to torch NCHW order: one-time n*cr-step sublane->lane relayout --------
    # (channel data must cross from sublanes to lanes exactly once; done here on the tiny
    #  pooled (cr, n*h4*w4) tensor, not per-pixel like before)
    for i in range(n):
        for c in range(cr):
            xfc_ref[i:i + 1, c * sp:(c + 1) * sp] = p2[c:c + 1, i * sp:(i + 1) * sp]

    # -------- fc1 + relu + fc2 (hidden and output padded to 128 lanes; lane-dense store) --------
    xfc = xfc_ref[...]                                                     # (n, cr*h4*w4)
    hfc = jnp.maximum(jnp.dot(xfc, fc1w_ref[...], preferred_element_type=f32) + fc1b_ref[...], 0.0)
    out_ref[...] = jnp.dot(hfc, fc2w_ref[...], preferred_element_type=f32) + fc2b_ref[...]


# ---------------- constant helpers (shape-only, constant-folded by XLA) ----------------

def _conv_border_masks(n, h, w):
    """(9, n*h*w) 0/1 masks: tap (ky,kx) is valid where the shifted read stays in-image."""
    p = jnp.arange(n * h * w)
    y = (p // w) % h
    x = p % w
    rows = []
    for ky in range(3):
        for kx in range(3):
            dy, dx = ky - 1, kx - 1
            ok = (y + dy >= 0) & (y + dy < h) & (x + dx >= 0) & (x + dx < w)
            rows.append(ok)
    return jnp.stack(rows).astype(jnp.float32)


def _pool_select(n, h, w):
    """(n*h*w, n*(h//2)*(w//2)) 0/1 matrix selecting the even (y,x) positions (pool compaction)."""
    h2, w2 = h // 2, w // 2
    j = jnp.arange(n * h2 * w2)
    i = j // (h2 * w2)
    rem = j % (h2 * w2)
    r, q = rem // w2, rem % w2
    src = i * h * w + (2 * r) * w + 2 * q
    return jax.nn.one_hot(src, n * h * w, dtype=jnp.float32).T


def _round_up(v, m):
    return ((v + m - 1) // m) * m


# ---------------- deterministic synthetic init (same scheme as before) ----------------

def init_params(key, input_width, input_height, input_channels,
                res_conv_channels, fc_hidden_units, output_units):
    pre_fc1_units = (input_width // 4) * (input_height // 4) * res_conv_channels
    k = jax.random.split(key, 6)
    return {
        "conv1_w": jax.random.normal(k[0], (res_conv_channels, input_channels, 3, 3),
                                     jnp.float32) * (2.0 / (9 * input_channels)) ** 0.5,
        "conv1_b": jax.random.normal(k[1], (res_conv_channels,), jnp.float32) * 0.01,
        # n_res_blocks * [ResBlock(...)] repeats ONE module => shared weights.
        "res_conv_w": jax.random.normal(k[2], (res_conv_channels, res_conv_channels, 3, 3),
                                        jnp.float32) * (2.0 / (9 * res_conv_channels)) ** 0.5,
        "bn_w": jnp.full((res_conv_channels,), 0.5, jnp.float32),
        "bn_b": jnp.zeros((res_conv_channels,), jnp.float32),
        "fc1_w": jax.random.normal(k[3], (fc_hidden_units, pre_fc1_units),
                                   jnp.float32) * (1.0 / pre_fc1_units) ** 0.5,
        "fc1_b": jax.random.normal(k[4], (fc_hidden_units,), jnp.float32) * 0.01,
        "fc2_w": jax.random.normal(k[5], (output_units, fc_hidden_units),
                                   jnp.float32) * (1.0 / fc_hidden_units) ** 0.5,
        "fc2_b": jnp.zeros((output_units,), jnp.float32),
    }


# ---------------- forward pass: one pallas_call ----------------

def net_res_deep_forward(x_nchw, params, n_res_blocks):
    n, cin, h, w = x_nchw.shape
    assert h % 4 == 0 and w % 4 == 0
    cr = params["conv1_w"].shape[0]
    fc_hidden, feat = params["fc1_w"].shape
    out_units = params["fc2_w"].shape[0]
    h2, w2, h4, w4 = h // 2, w // 2, h // 4, w // 4
    assert feat == cr * h4 * w4

    fc_pad = _round_up(fc_hidden, 128)
    out_pad = _round_up(out_units, 128)

    # ---- weight prep (trace-time only; folded ordering, padded fc dims) ----
    # conv weights as (tap*Cout, Cin): row t*cr+co = weight[co, :, ky, kx], t = ky*3+kx
    w1 = jnp.transpose(params["conv1_w"], (2, 3, 0, 1)).reshape(9 * cr, cin)
    wr = jnp.transpose(params["res_conv_w"], (2, 3, 0, 1)).reshape(9 * cr, cr)
    b1 = params["conv1_b"].reshape(cr, 1)
    gamma = params["bn_w"].reshape(cr, 1)
    beta = params["bn_b"].reshape(cr, 1)
    fc1w = jnp.zeros((feat, fc_pad), jnp.float32).at[:, :fc_hidden].set(params["fc1_w"].T)
    fc1b = jnp.zeros((1, fc_pad), jnp.float32).at[:, :fc_hidden].set(params["fc1_b"])
    fc2w = jnp.zeros((fc_pad, out_pad), jnp.float32).at[:fc_hidden, :out_units].set(params["fc2_w"].T)
    fc2b = jnp.zeros((1, out_pad), jnp.float32).at[:, :out_units].set(params["fc2_b"])

    masks1 = _conv_border_masks(n, h, w)      # (9, n*h*w)
    masks2 = _conv_border_masks(n, h2, w2)    # (9, n*h2*w2)
    sel1 = _pool_select(n, h, w)              # (n*h*w,   n*h2*w2)
    sel2 = _pool_select(n, h2, w2)            # (n*h2*w2, n*h4*w4)

    # NCHW -> (Cin, N*H*W): channels on sublanes, batch*spatial on lanes (lane-dense).
    x2d = jnp.transpose(x_nchw, (1, 0, 2, 3)).reshape(cin, n * h * w).astype(jnp.float32)

    kernel = functools.partial(_netresdeep_kernel, n=n, h=h, w=w, cr=cr,
                               n_res_blocks=n_res_blocks)
    vmem = pl.BlockSpec(memory_space=pltpu.MemorySpace.VMEM)

    out_padded = pl.pallas_call(
        kernel,
        out_shape=jax.ShapeDtypeStruct((n, out_pad), jnp.float32),
        in_specs=[vmem] * 14,
        out_specs=vmem,
        scratch_shapes=[pltpu.VMEM((n, feat), jnp.float32)],   # flattened features for fc1
        compiler_params=pltpu.CompilerParams(vmem_limit_bytes=32 * 1024 * 1024),
    )(x2d, w1, b1, wr, gamma, beta, masks1, masks2, sel1, sel2, fc1w, fc1b, fc2w, fc2b)

    return out_padded[:, :out_units]


# ---------------- pure-JAX reference (for in-script correctness check) ----------------

def _pool2_ref(x):
    n, c, h, w = x.shape
    return jnp.max(x.reshape(n, c, h // 2, 2, w // 2, 2), axis=(3, 5))


def _reference_forward(x, params, n_res_blocks):
    dn = ("NCHW", "OIHW", "NCHW")
    hp = lax.Precision.HIGHEST
    out = lax.conv_general_dilated(x, params["conv1_w"], (1, 1), "SAME",
                                   dimension_numbers=dn, precision=hp)
    out = jnp.maximum(out + params["conv1_b"].reshape(1, -1, 1, 1), 0.0)
    out = _pool2_ref(out)
    for _ in range(n_res_blocks):
        c = lax.conv_general_dilated(out, params["res_conv_w"], (1, 1), "SAME",
                                     dimension_numbers=dn, precision=hp)
        mean = jnp.mean(c, axis=(0, 2, 3), keepdims=True)
        var = jnp.mean((c - mean) ** 2, axis=(0, 2, 3), keepdims=True)
        y = (c - mean) * lax.rsqrt(var + 1e-5)
        y = y * params["bn_w"].reshape(1, -1, 1, 1) + params["bn_b"].reshape(1, -1, 1, 1)
        out = jnp.maximum(y, 0.0) + out
    out = _pool2_ref(out)
    feat = out.reshape(out.shape[0], -1)
    hfc = jnp.maximum(jnp.dot(feat, params["fc1_w"].T, precision=hp) + params["fc1_b"], 0.0)
    return jnp.dot(hfc, params["fc2_w"].T, precision=hp) + params["fc2_b"]


if __name__ == "__main__":
    INPUT_W, INPUT_H = 16, 16
    INPUT_C = 4
    N_RES_BLOCKS = 2
    RES_CH = 8
    FC_HIDDEN = 32
    OUT_UNITS = 10
    BATCH = 2

    key = jax.random.PRNGKey(0)
    kx, kp = jax.random.split(key)
    params = init_params(kp, INPUT_W, INPUT_H, INPUT_C, RES_CH, FC_HIDDEN, OUT_UNITS)
    x = jax.random.normal(kx, (BATCH, INPUT_C, INPUT_H, INPUT_W), jnp.float32)

    fwd = jax.jit(lambda xx: net_res_deep_forward(xx, params, N_RES_BLOCKS))
    out = fwd(x)
    jax.block_until_ready(out)
    assert out.shape == (BATCH, OUT_UNITS), out.shape
    assert bool(jnp.all(jnp.isfinite(out)))

    ref = jax.jit(lambda xx: _reference_forward(xx, params, N_RES_BLOCKS))(x)
    err = float(jnp.max(jnp.abs(out - ref)))
    assert err < 5e-2, f"kernel/reference mismatch: max abs err {err}"
    print("KERNEL_OK")
</pallas_src>

<mosaic_0001>
module attributes {stable_mosaic.version = 11 : i64} {
  func.func @_netresdeep_kernel(%arg0: memref<4x512xf32, #tpu.memory_space<vmem>>, %arg1: memref<72x4xf32, #tpu.memory_space<vmem>>, %arg2: memref<8x1xf32, #tpu.memory_space<vmem>>, %arg3: memref<72x8xf32, #tpu.memory_space<vmem>>, %arg4: memref<8x1xf32, #tpu.memory_space<vmem>>, %arg5: memref<8x1xf32, #tpu.memory_space<vmem>>, %arg6: memref<9x512xf32, #tpu.memory_space<vmem>>, %arg7: memref<9x128xf32, #tpu.memory_space<vmem>>, %arg8: memref<512x128xf32, #tpu.memory_space<vmem>>, %arg9: memref<128x32xf32, #tpu.memory_space<vmem>>, %arg10: memref<128x128xf32, #tpu.memory_space<vmem>>, %arg11: memref<1x128xf32, #tpu.memory_space<vmem>>, %arg12: memref<128x128xf32, #tpu.memory_space<vmem>>, %arg13: memref<1x128xf32, #tpu.memory_space<vmem>>, %arg14: memref<2x128xf32, #tpu.memory_space<vmem>>, %arg15: memref<2x128xf32, #tpu.memory_space<vmem>>) attributes {dimension_semantics = [], scalar_prefetch = 0 : i64, scratch_operands = 1 : i64, tpu.core_type = #tpu.core_type<tc>} {
    %c0 = arith.constant 0 : index
    %c0_0 = arith.constant 0 : index
    %0 = vector.load %arg6[%c0, %c0_0] : memref<9x512xf32, #tpu.memory_space<vmem>>, vector<1x512xf32>
    %c1 = arith.constant 1 : index
    %c0_1 = arith.constant 0 : index
    %1 = vector.load %arg6[%c1, %c0_1] : memref<9x512xf32, #tpu.memory_space<vmem>>, vector<1x512xf32>
    %c2 = arith.constant 2 : index
    %c0_2 = arith.constant 0 : index
    %2 = vector.load %arg6[%c2, %c0_2] : memref<9x512xf32, #tpu.memory_space<vmem>>, vector<1x512xf32>
    %c3 = arith.constant 3 : index
    %c0_3 = arith.constant 0 : index
    %3 = vector.load %arg6[%c3, %c0_3] : memref<9x512xf32, #tpu.memory_space<vmem>>, vector<1x512xf32>
    %c4 = arith.constant 4 : index
    %c0_4 = arith.constant 0 : index
    %4 = vector.load %arg6[%c4, %c0_4] : memref<9x512xf32, #tpu.memory_space<vmem>>, vector<1x512xf32>
    %c5 = arith.constant 5 : index
    %c0_5 = arith.constant 0 : index
    %5 = vector.load %arg6[%c5, %c0_5] : memref<9x512xf32, #tpu.memory_space<vmem>>, vector<1x512xf32>
    %c6 = arith.constant 6 : index
    %c0_6 = arith.constant 0 : index
    %6 = vector.load %arg6[%c6, %c0_6] : memref<9x512xf32, #tpu.memory_space<vmem>>, vector<1x512xf32>
    %c7 = arith.constant 7 : index
    %c0_7 = arith.constant 0 : index
    %7 = vector.load %arg6[%c7, %c0_7] : memref<9x512xf32, #tpu.memory_space<vmem>>, vector<1x512xf32>
    %c8 = arith.constant 8 : index
    %c0_8 = arith.constant 0 : index
    %8 = vector.load %arg6[%c8, %c0_8] : memref<9x512xf32, #tpu.memory_space<vmem>>, vector<1x512xf32>
    %c0_9 = arith.constant 0 : index
    %c0_10 = arith.constant 0 : index
    %9 = vector.load %arg7[%c0_9, %c0_10] : memref<9x128xf32, #tpu.memory_space<vmem>>, vector<1x128xf32>
    %c1_11 = arith.constant 1 : index
    %c0_12 = arith.constant 0 : index
    %10 = vector.load %arg7[%c1_11, %c0_12] : memref<9x128xf32, #tpu.memory_space<vmem>>, vector<1x128xf32>
    %c2_13 = arith.constant 2 : index
    %c0_14 = arith.constant 0 : index
    %11 = vector.load %arg7[%c2_13, %c0_14] : memref<9x128xf32, #tpu.memory_space<vmem>>, vector<1x128xf32>
    %c3_15 = arith.constant 3 : index
    %c0_16 = arith.constant 0 : index
    %12 = vector.load %arg7[%c3_15, %c0_16] : memref<9x128xf32, #tpu.memory_space<vmem>>, vector<1x128xf32>
    %c4_17 = arith.constant 4 : index
    %c0_18 = arith.constant 0 : index
    %13 = vector.load %arg7[%c4_17, %c0_18] : memref<9x128xf32, #tpu.memory_space<vmem>>, vector<1x128xf32>
    %c5_19 = arith.constant 5 : index
    %c0_20 = arith.constant 0 : index
    %14 = vector.load %arg7[%c5_19, %c0_20] : memref<9x128xf32, #tpu.memory_space<vmem>>, vector<1x128xf32>
    %c6_21 = arith.constant 6 : index
    %c0_22 = arith.constant 0 : index
    %15 = vector.load %arg7[%c6_21, %c0_22] : memref<9x128xf32, #tpu.memory_space<vmem>>, vector<1x128xf32>
    %c7_23 = arith.constant 7 : index
    %c0_24 = arith.constant 0 : index
    %16 = vector.load %arg7[%c7_23, %c0_24] : memref<9x128xf32, #tpu.memory_space<vmem>>, vector<1x128xf32>
    %c8_25 = arith.constant 8 : index
    %c0_26 = arith.constant 0 : index
    %17 = vector.load %arg7[%c8_25, %c0_26] : memref<9x128xf32, #tpu.memory_space<vmem>>, vector<1x128xf32>
    %c0_27 = arith.constant 0 : index
    %c0_28 = arith.constant 0 : index
    %18 = vector.load %arg1[%c0_27, %c0_28] : memref<72x4xf32, #tpu.memory_space<vmem>>, vector<72x4xf32>
    %c0_29 = arith.constant 0 : index
    %c0_30 = arith.constant 0 : index
    %19 = vector.load %arg0[%c0_29, %c0_30] : memref<4x512xf32, #tpu.memory_space<vmem>>, vector<4x512xf32>
    %cst = arith.constant dense<0.000000e+00> : vector<72x512xf32>
    %20 = tpu.matmul %18, %19, %cst {dimension_numbers = #tpu.dot_dimension_numbers<[1], [0], [0], [1], [0, 0, 1, 1], [], []>} : vector<72x4xf32>, vector<4x512xf32>, vector<72x512xf32> -> vector<72x512xf32>
    %cst_31 = arith.constant 0.000000e+00 : f32
    %21 = vector.broadcast %cst_31 : f32 to vector<8x512xf32>
    %22 = vector.extract_strided_slice %20 {offsets = [0, 0], sizes = [8, 512], strides = [1, 1]} : vector<72x512xf32> to vector<8x512xf32>
    %c17_i32 = arith.constant 17 : i32
    %23 = tpu.dynamic_rotate %22 by %c17_i32 dim 1 : vector<8x512xf32>, i32 -> vector<8x512xf32>
    %24 = vector.broadcast %0 : vector<1x512xf32> to vector<8x512xf32>
    %25 = arith.mulf %24, %23 : vector<8x512xf32>
    %26 = arith.addf %21, %25 : vector<8x512xf32>
    %27 = vector.extract_strided_slice %20 {offsets = [8, 0], sizes = [8, 512], strides = [1, 1]} : vector<72x512xf32> to vector<8x512xf32>
    %c16_i32 = arith.constant 16 : i32
    %28 = tpu.dynamic_rotate %27 by %c16_i32 dim 1 : vector<8x512xf32>, i32 -> vector<8x512xf32>
    %29 = vector.broadcast %1 : vector<1x512xf32> to vector<8x512xf32>
    %30 = arith.mulf %29, %28 : vector<8x512xf32>
    %31 = arith.addf %26, %30 : vector<8x512xf32>
    %32 = vector.extract_strided_slice %20 {offsets = [16, 0], sizes = [8, 512], strides = [1, 1]} : vector<72x512xf32> to vector<8x512xf32>
    %c15_i32 = arith.constant 15 : i32
    %33 = tpu.dynamic_rotate %32 by %c15_i32 dim 1 : vector<8x512xf32>, i32 -> vector<8x512xf32>
    %34 = vector.broadcast %2 : vector<1x512xf32> to vector<8x512xf32>
    %35 = arith.mulf %34, %33 : vector<8x512xf32>
    %36 = arith.addf %31, %35 : vector<8x512xf32>
    %37 = vector.extract_strided_slice %20 {offsets = [24, 0], sizes = [8, 512], strides = [1, 1]} : vector<72x512xf32> to vector<8x512xf32>
    %c1_i32 = arith.constant 1 : i32
    %38 = tpu.dynamic_rotate %37 by %c1_i32 dim 1 : vector<8x512xf32>, i32 -> vector<8x512xf32>
    %39 = vector.broadcast %3 : vector<1x512xf32> to vector<8x512xf32>
    %40 = arith.mulf %39, %38 : vector<8x512xf32>
    %41 = arith.addf %36, %40 : vector<8x512xf32>
    %42 = vector.extract_strided_slice %20 {offsets = [32, 0], sizes = [8, 512], strides = [1, 1]} : vector<72x512xf32> to vector<8x512xf32>
    %43 = vector.broadcast %4 : vector<1x512xf32> to vector<8x512xf32>
    %44 = arith.mulf %43, %42 : vector<8x512xf32>
    %45 = arith.addf %41, %44 : vector<8x512xf32>
    %46 = vector.extract_strided_slice %20 {offsets = [40, 0], sizes = [8, 512], strides = [1, 1]} : vector<72x512xf32> to vector<8x512xf32>
    %c511_i32 = arith.constant 511 : i32
    %47 = tpu.dynamic_rotate %46 by %c511_i32 dim 1 : vector<8x512xf32>, i32 -> vector<8x512xf32>
    %48 = vector.broadcast %5 : vector<1x512xf32> to vector<8x512xf32>
    %49 = arith.mulf %48, %47 : vector<8x512xf32>
    %50 = arith.addf %45, %49 : vector<8x512xf32>
    %51 = vector.extract_strided_slice %20 {offsets = [48, 0], sizes = [8, 512], strides = [1, 1]} : vector<72x512xf32> to vector<8x512xf32>
    %c497_i32 = arith.constant 497 : i32
    %52 = tpu.dynamic_rotate %51 by %c497_i32 dim 1 : vector<8x512xf32>, i32 -> vector<8x512xf32>
    %53 = vector.broadcast %6 : vector<1x512xf32> to vector<8x512xf32>
    %54 = arith.mulf %53, %52 : vector<8x512xf32>
    %55 = arith.addf %50, %54 : vector<8x512xf32>
    %56 = vector.extract_strided_slice %20 {offsets = [56, 0], sizes = [8, 512], strides = [1, 1]} : vector<72x512xf32> to vector<8x512xf32>
    %c496_i32 = arith.constant 496 : i32
    %57 = tpu.dynamic_rotate %56 by %c496_i32 dim 1 : vector<8x512xf32>, i32 -> vector<8x512xf32>
    %58 = vector.broadcast %7 : vector<1x512xf32> to vector<8x512xf32>
    %59 = arith.mulf %58, %57 : vector<8x512xf32>
    %60 = arith.addf %55, %59 : vector<8x512xf32>
    %61 = vector.extract_strided_slice %20 {offsets = [64, 0], sizes = [8, 512], strides = [1, 1]} : vector<72x512xf32> to vector<8x512xf32>
    %c495_i32 = arith.constant 495 : i32
    %62 = tpu.dynamic_rotate %61 by %c495_i32 dim 1 : vector<8x512xf32>, i32 -> vector<8x512xf32>
    %63 = vector.broadcast %8 : vector<1x512xf32> to vector<8x512xf32>
    %64 = arith.mulf %63, %62 : vector<8x512xf32>
    %65 = arith.addf %60, %64 : vector<8x512xf32>
    %c0_32 = arith.constant 0 : index
    %c0_33 = arith.constant 0 : index
    %66 = vector.load %arg2[%c0_32, %c0_33] : memref<8x1xf32, #tpu.memory_space<vmem>>, vector<8x1xf32>
    %67 = vector.broadcast %66 : vector<8x1xf32> to vector<8x512xf32>
    %68 = arith.addf %65, %67 : vector<8x512xf32>
    %cst_34 = arith.constant 0.000000e+00 : f32
    %69 = vector.broadcast %cst_34 : f32 to vector<8x512xf32>
    %70 = arith.maximumf %68, %69 : vector<8x512xf32>
    %c511_i32_35 = arith.constant 511 : i32
    %71 = tpu.dynamic_rotate %70 by %c511_i32_35 dim 1 : vector<8x512xf32>, i32 -> vector<8x512xf32>
    %72 = arith.maximumf %70, %71 : vector<8x512xf32>
    %c496_i32_36 = arith.constant 496 : i32
    %73 = tpu.dynamic_rotate %70 by %c496_i32_36 dim 1 : vector<8x512xf32>, i32 -> vector<8x512xf32>
    %c495_i32_37 = arith.constant 495 : i32
    %74 = tpu.dynamic_rotate %70 by %c495_i32_37 dim 1 : vector<8x512xf32>, i32 -> vector<8x512xf32>
    %75 = arith.maximumf %73, %74 : vector<8x512xf32>
    %76 = arith.maximumf %72, %75 : vector<8x512xf32>
    %c0_38 = arith.constant 0 : index
    %c0_39 = arith.constant 0 : index
    %77 = vector.load %arg8[%c0_38, %c0_39] : memref<512x128xf32, #tpu.memory_space<vmem>>, vector<512x128xf32>
    %cst_40 = arith.constant dense<0.000000e+00> : vector<8x128xf32>
    %78 = tpu.matmul %76, %77, %cst_40 {dimension_numbers = #tpu.dot_dimension_numbers<[1], [0], [0], [1], [0, 0, 1, 1], [], []>} : vector<8x512xf32>, vector<512x128xf32>, vector<8x128xf32> -> vector<8x128xf32>
    %c0_41 = arith.constant 0 : index
    %c0_42 = arith.constant 0 : index
    %79 = vector.load %arg3[%c0_41, %c0_42] : memref<72x8xf32, #tpu.memory_space<vmem>>, vector<72x8xf32>
    %c0_43 = arith.constant 0 : index
    %c0_44 = arith.constant 0 : index
    %80 = vector.load %arg4[%c0_43, %c0_44] : memref<8x1xf32, #tpu.memory_space<vmem>>, vector<8x1xf32>
    %c0_45 = arith.constant 0 : index
    %c0_46 = arith.constant 0 : index
    %81 = vector.load %arg5[%c0_45, %c0_46] : memref<8x1xf32, #tpu.memory_space<vmem>>, vector<8x1xf32>
    %cst_47 = arith.constant dense<0.000000e+00> : vector<72x128xf32>
    %82 = tpu.matmul %79, %78, %cst_47 {dimension_numbers = #tpu.dot_dimension_numbers<[1], [0], [0], [1], [0, 0, 1, 1], [], []>} : vector<72x8xf32>, vector<8x128xf32>, vector<72x128xf32> -> vector<72x128xf32>
    %cst_48 = arith.constant 0.000000e+00 : f32
    %83 = vector.broadcast %cst_48 : f32 to vector<8x128xf32>
    %84 = vector.extract_strided_slice %82 {offsets = [0, 0], sizes = [8, 128], strides = [1, 1]} : vector<72x128xf32> to vector<8x128xf32>
    %c9_i32 = arith.constant 9 : i32
    %85 = tpu.dynamic_rotate %84 by %c9_i32 dim 1 : vector<8x128xf32>, i32 -> vector<8x128xf32>
    %86 = vector.broadcast %9 : vector<1x128xf32> to vector<8x128xf32>
    %87 = arith.mulf %86, %85 : vector<8x128xf32>
    %88 = arith.addf %83, %87 : vector<8x128xf32>
    %89 = vector.extract_strided_slice %82 {offsets = [8, 0], sizes = [8, 128], strides = [1, 1]} : vector<72x128xf32> to vector<8x128xf32>
    %c8_i32 = arith.constant 8 : i32
    %90 = tpu.dynamic_rotate %89 by %c8_i32 dim 1 : vector<8x128xf32>, i32 -> vector<8x128xf32>
    %91 = vector.broadcast %10 : vector<1x128xf32> to vector<8x128xf32>
    %92 = arith.mulf %91, %90 : vector<8x128xf32>
    %93 = arith.addf %88, %92 : vector<8x128xf32>
    %94 = vector.extract_strided_slice %82 {offsets = [16, 0], sizes = [8, 128], strides = [1, 1]} : vector<72x128xf32> to vector<8x128xf32>
    %c7_i32 = arith.constant 7 : i32
    %95 = tpu.dynamic_rotate %94 by %c7_i32 dim 1 : vector<8x128xf32>, i32 -> vector<8x128xf32>
    %96 = vector.broadcast %11 : vector<1x128xf32> to vector<8x128xf32>
    %97 = arith.mulf %96, %95 : vector<8x128xf32>
    %98 = arith.addf %93, %97 : vector<8x128xf32>
    %99 = vector.extract_strided_slice %82 {offsets = [24, 0], sizes = [8, 128], strides = [1, 1]} : vector<72x128xf32> to vector<8x128xf32>
    %c1_i32_49 = arith.constant 1 : i32
    %100 = tpu.dynamic_rotate %99 by %c1_i32_49 dim 1 : vector<8x128xf32>, i32 -> vector<8x128xf32>
    %101 = vector.broadcast %12 : vector<1x128xf32> to vector<8x128xf32>
    %102 = arith.mulf %101, %100 : vector<8x128xf32>
    %103 = arith.addf %98, %102 : vector<8x128xf32>
    %104 = vector.extract_strided_slice %82 {offsets = [32, 0], sizes = [8, 128], strides = [1, 1]} : vector<72x128xf32> to vector<8x128xf32>
    %105 = vector.broadcast %13 : vector<1x128xf32> to vector<8x128xf32>
    %106 = arith.mulf %105, %104 : vector<8x128xf32>
    %107 = arith.addf %103, %106 : vector<8x128xf32>
    %108 = vector.extract_strided_slice %82 {offsets = [40, 0], sizes = [8, 128], strides = [1, 1]} : vector<72x128xf32> to vector<8x128xf32>
    %c127_i32 = arith.constant 127 : i32
    %109 = tpu.dynamic_rotate %108 by %c127_i32 dim 1 : vector<8x128xf32>, i32 -> vector<8x128xf32>
    %110 = vector.broadcast %14 : vector<1x128xf32> to vector<8x128xf32>
    %111 = arith.mulf %110, %109 : vector<8x128xf32>
    %112 = arith.addf %107, %111 : vector<8x128xf32>
    %113 = vector.extract_strided_slice %82 {offsets = [48, 0], sizes = [8, 128], strides = [1, 1]} : vector<72x128xf32> to vector<8x128xf32>
    %c121_i32 = arith.constant 121 : i32
    %114 = tpu.dynamic_rotate %113 by %c121_i32 dim 1 : vector<8x128xf32>, i32 -> vector<8x128xf32>
    %115 = vector.broadcast %15 : vector<1x128xf32> to vector<8x128xf32>
    %116 = arith.mulf %115, %114 : vector<8x128xf32>
    %117 = arith.addf %112, %116 : vector<8x128xf32>
    %118 = vector.extract_strided_slice %82 {offsets = [56, 0], sizes = [8, 128], strides = [1, 1]} : vector<72x128xf32> to vector<8x128xf32>
    %c120_i32 = arith.constant 120 : i32
    %119 = tpu.dynamic_rotate %118 by %c120_i32 dim 1 : vector<8x128xf32>, i32 -> vector<8x128xf32>
    %120 = vector.broadcast %16 : vector<1x128xf32> to vector<8x128xf32>
    %121 = arith.mulf %120, %119 : vector<8x128xf32>
    %122 = arith.addf %117, %121 : vector<8x128xf32>
    %123 = vector.extract_strided_slice %82 {offsets = [64, 0], sizes = [8, 128], strides = [1, 1]} : vector<72x128xf32> to vector<8x128xf32>
    %c119_i32 = arith.constant 119 : i32
    %124 = tpu.dynamic_rotate %123 by %c119_i32 dim 1 : vector<8x128xf32>, i32 -> vector<8x128xf32>
    %125 = vector.broadcast %17 : vector<1x128xf32> to vector<8x128xf32>
    %126 = arith.mulf %125, %124 : vector<8x128xf32>
    %127 = arith.addf %122, %126 : vector<8x128xf32>
    %cst_50 = arith.constant dense<0.000000e+00> : vector<8xf32>
    %128 = vector.multi_reduction <add>, %127, %cst_50 [1] : vector<8x128xf32> to vector<8xf32>
    %129 = vector.shape_cast %128 : vector<8xf32> to vector<8x1xf32>
    %cst_51 = arith.constant 7.812500e-03 : f32
    %130 = vector.broadcast %cst_51 : f32 to vector<8x1xf32>
    %131 = arith.mulf %129, %130 : vector<8x1xf32>
    %132 = vector.broadcast %131 : vector<8x1xf32> to vector<8x128xf32>
    %133 = arith.subf %127, %132 : vector<8x128xf32>
    %134 = arith.mulf %133, %133 : vector<8x128xf32>
    %cst_52 = arith.constant dense<0.000000e+00> : vector<8xf32>
    %135 = vector.multi_reduction <add>, %134, %cst_52 [1] : vector<8x128xf32> to vector<8xf32>
    %136 = vector.shape_cast %135 : vector<8xf32> to vector<8x1xf32>
    %cst_53 = arith.constant 7.812500e-03 : f32
    %137 = vector.broadcast %cst_53 : f32 to vector<8x1xf32>
    %138 = arith.mulf %136, %137 : vector<8x1xf32>
    %cst_54 = arith.constant 9.99999974E-6 : f32
    %139 = vector.broadcast %cst_54 : f32 to vector<8x1xf32>
    %140 = arith.addf %138, %139 : vector<8x1xf32>
    %141 = math.rsqrt %140 : vector<8x1xf32>
    %142 = vector.broadcast %141 : vector<8x1xf32> to vector<8x128xf32>
    %143 = arith.mulf %133, %142 : vector<8x128xf32>
    %144 = vector.broadcast %80 : vector<8x1xf32> to vector<8x128xf32>
    %145 = arith.mulf %144, %143 : vector<8x128xf32>
    %146 = vector.broadcast %81 : vector<8x1xf32> to vector<8x128xf32>
    %147 = arith.addf %145, %146 : vector<8x128xf32>
    %cst_55 = arith.constant 0.000000e+00 : f32
    %148 = vector.broadcast %cst_55 : f32 to vector<8x128xf32>
    %149 = arith.maximumf %147, %148 : vector<8x128xf32>
    %150 = arith.addf %149, %78 : vector<8x128xf32>
    %cst_56 = arith.constant dense<0.000000e+00> : vector<72x128xf32>
    %151 = tpu.matmul %79, %150, %cst_56 {dimension_numbers = #tpu.dot_dimension_numbers<[1], [0], [0], [1], [0, 0, 1, 1], [], []>} : vector<72x8xf32>, vector<8x128xf32>, vector<72x128xf32> -> vector<72x128xf32>
    %cst_57 = arith.constant 0.000000e+00 : f32
    %152 = vector.broadcast %cst_57 : f32 to vector<8x128xf32>
    %153 = vector.extract_strided_slice %151 {offsets = [0, 0], sizes = [8, 128], strides = [1, 1]} : vector<72x128xf32> to vector<8x128xf32>
    %c9_i32_58 = arith.constant 9 : i32
    %154 = tpu.dynamic_rotate %153 by %c9_i32_58 dim 1 : vector<8x128xf32>, i32 -> vector<8x128xf32>
    %155 = vector.broadcast %9 : vector<1x128xf32> to vector<8x128xf32>
    %156 = arith.mulf %155, %154 : vector<8x128xf32>
    %157 = arith.addf %152, %156 : vector<8x128xf32>
    %158 = vector.extract_strided_slice %151 {offsets = [8, 0], sizes = [8, 128], strides = [1, 1]} : vector<72x128xf32> to vector<8x128xf32>
    %c8_i32_59 = arith.constant 8 : i32
    %159 = tpu.dynamic_rotate %158 by %c8_i32_59 dim 1 : vector<8x128xf32>, i32 -> vector<8x128xf32>
    %160 = vector.broadcast %10 : vector<1x128xf32> to vector<8x128xf32>
    %161 = arith.mulf %160, %159 : vector<8x128xf32>
    %162 = arith.addf %157, %161 : vector<8x128xf32>
    %163 = vector.extract_strided_slice %151 {offsets = [16, 0], sizes = [8, 128], strides = [1, 1]} : vector<72x128xf32> to vector<8x128xf32>
    %c7_i32_60 = arith.constant 7 : i32
    %164 = tpu.dynamic_rotate %163 by %c7_i32_60 dim 1 : vector<8x128xf32>, i32 -> vector<8x128xf32>
    %165 = vector.broadcast %11 : vector<1x128xf32> to vector<8x128xf32>
    %166 = arith.mulf %165, %164 : vector<8x128xf32>
    %167 = arith.addf %162, %166 : vector<8x128xf32>
    %168 = vector.extract_strided_slice %151 {offsets = [24, 0], sizes = [8, 128], strides = [1, 1]} : vector<72x128xf32> to vector<8x128xf32>
    %c1_i32_61 = arith.constant 1 : i32
    %169 = tpu.dynamic_rotate %168 by %c1_i32_61 dim 1 : vector<8x128xf32>, i32 -> vector<8x128xf32>
    %170 = vector.broadcast %12 : vector<1x128xf32> to vector<8x128xf32>
    %171 = arith.mulf %170, %169 : vector<8x128xf32>
    %172 = arith.addf %167, %171 : vector<8x128xf32>
    %173 = vector.extract_strided_slice %151 {offsets = [32, 0], sizes = [8, 128], strides = [1, 1]} : vector<72x128xf32> to vector<8x128xf32>
    %174 = vector.broadcast %13 : vector<1x128xf32> to vector<8x128xf32>
    %175 = arith.mulf %174, %173 : vector<8x128xf32>
    %176 = arith.addf %172, %175 : vector<8x128xf32>
    %177 = vector.extract_strided_slice %151 {offsets = [40, 0], sizes = [8, 128], strides = [1, 1]} : vector<72x128xf32> to vector<8x128xf32>
    %c127_i32_62 = arith.constant 127 : i32
    %178 = tpu.dynamic_rotate %177 by %c127_i32_62 dim 1 : vector<8x128xf32>, i32 -> vector<8x128xf32>
    %179 = vector.broadcast %14 : vector<1x128xf32> to vector<8x128xf32>
    %180 = arith.mulf %179, %178 : vector<8x128xf32>
    %181 = arith.addf %176, %180 : vector<8x128xf32>
    %182 = vector.extract_strided_slice %151 {offsets = [48, 0], sizes = [8, 128], strides = [1, 1]} : vector<72x128xf32> to vector<8x128xf32>
    %c121_i32_63 = arith.constant 121 : i32
    %183 = tpu.dynamic_rotate %182 by %c121_i32_63 dim 1 : vector<8x128xf32>, i32 -> vector<8x128xf32>
    %184 = vector.broadcast %15 : vector<1x128xf32> to vector<8x128xf32>
    %185 = arith.mulf %184, %183 : vector<8x128xf32>
    %186 = arith.addf %181, %185 : vector<8x128xf32>
    %187 = vector.extract_strided_slice %151 {offsets = [56, 0], sizes = [8, 128], strides = [1, 1]} : vector<72x128xf32> to vector<8x128xf32>
    %c120_i32_64 = arith.constant 120 : i32
    %188 = tpu.dynamic_rotate %187 by %c120_i32_64 dim 1 : vector<8x128xf32>, i32 -> vector<8x128xf32>
    %189 = vector.broadcast %16 : vector<1x128xf32> to vector<8x128xf32>
    %190 = arith.mulf %189, %188 : vector<8x128xf32>
    %191 = arith.addf %186, %190 : vector<8x128xf32>
    %192 = vector.extract_strided_slice %151 {offsets = [64, 0], sizes = [8, 128], strides = [1, 1]} : vector<72x128xf32> to vector<8x128xf32>
    %c119_i32_65 = arith.constant 119 : i32
    %193 = tpu.dynamic_rotate %192 by %c119_i32_65 dim 1 : vector<8x128xf32>, i32 -> vector<8x128xf32>
    %194 = vector.broadcast %17 : vector<1x128xf32> to vector<8x128xf32>
    %195 = arith.mulf %194, %193 : vector<8x128xf32>
    %196 = arith.addf %191, %195 : vector<8x128xf32>
    %cst_66 = arith.constant dense<0.000000e+00> : vector<8xf32>
    %197 = vector.multi_reduction <add>, %196, %cst_66 [1] : vector<8x128xf32> to vector<8xf32>
    %198 = vector.shape_cast %197 : vector<8xf32> to vector<8x1xf32>
    %cst_67 = arith.constant 7.812500e-03 : f32
    %199 = vector.broadcast %cst_67 : f32 to vector<8x1xf32>
    %200 = arith.mulf %198, %199 : vector<8x1xf32>
    %201 = vector.broadcast %200 : vector<8x1xf32> to vector<8x128xf32>
    %202 = arith.subf %196, %201 : vector<8x128xf32>
    %203 = arith.mulf %202, %202 : vector<8x128xf32>
    %cst_68 = arith.constant dense<0.000000e+00> : vector<8xf32>
    %204 = vector.multi_reduction <add>, %203, %cst_68 [1] : vector<8x128xf32> to vector<8xf32>
    %205 = vector.shape_cast %204 : vector<8xf32> to vector<8x1xf32>
    %cst_69 = arith.constant 7.812500e-03 : f32
    %206 = vector.broadcast %cst_69 : f32 to vector<8x1xf32>
    %207 = arith.mulf %205, %206 : vector<8x1xf32>
    %cst_70 = arith.constant 9.99999974E-6 : f32
    %208 = vector.broadcast %cst_70 : f32 to vector<8x1xf32>
    %209 = arith.addf %207, %208 : vector<8x1xf32>
    %210 = math.rsqrt %209 : vector<8x1xf32>
    %211 = vector.broadcast %210 : vector<8x1xf32> to vector<8x128xf32>
    %212 = arith.mulf %202, %211 : vector<8x128xf32>
    %213 = vector.broadcast %80 : vector<8x1xf32> to vector<8x128xf32>
    %214 = arith.mulf %213, %212 : vector<8x128xf32>
    %215 = vector.broadcast %81 : vector<8x1xf32> to vector<8x128xf32>
    %216 = arith.addf %214, %215 : vector<8x128xf32>
    %cst_71 = arith.constant 0.000000e+00 : f32
    %217 = vector.broadcast %cst_71 : f32 to vector<8x128xf32>
    %218 = arith.maximumf %216, %217 : vector<8x128xf32>
    %219 = arith.addf %218, %150 : vector<8x128xf32>
    %c127_i32_72 = arith.constant 127 : i32
    %220 = tpu.dynamic_rotate %219 by %c127_i32_72 dim 1 : vector<8x128xf32>, i32 -> vector<8x128xf32>
    %221 = arith.maximumf %219, %220 : vector<8x128xf32>
    %c120_i32_73 = arith.constant 120 : i32
    %222 = tpu.dynamic_rotate %219 by %c120_i32_73 dim 1 : vector<8x128xf32>, i32 -> vector<8x128xf32>
    %c119_i32_74 = arith.constant 119 : i32
    %223 = tpu.dynamic_rotate %219 by %c119_i32_74 dim 1 : vector<8x128xf32>, i32 -> vector<8x128xf32>
    %224 = arith.maximumf %222, %223 : vector<8x128xf32>
    %225 = arith.maximumf %221, %224 : vector<8x128xf32>
    %c0_75 = arith.constant 0 : index
    %c0_76 = arith.constant 0 : index
    %226 = vector.load %arg9[%c0_75, %c0_76] : memref<128x32xf32, #tpu.memory_space<vmem>>, vector<128x32xf32>
    %cst_77 = arith.constant dense<0.000000e+00> : vector<8x32xf32>
    %227 = tpu.matmul %225, %226, %cst_77 {dimension_numbers = #tpu.dot_dimension_numbers<[1], [0], [0], [1], [0, 0, 1, 1], [], []>} : vector<8x128xf32>, vector<128x32xf32>, vector<8x32xf32> -> vector<8x32xf32>
    %228 = vector.extract_strided_slice %227 {offsets = [0, 0], sizes = [1, 16], strides = [1, 1]} : vector<8x32xf32> to vector<1x16xf32>
    %c0_78 = arith.constant 0 : index
    %c0_79 = arith.constant 0 : index
    %229 = vector.load %arg15[%c0_78, %c0_79] : memref<2x128xf32, #tpu.memory_space<vmem>>, vector<1x16xf32>
    tpu.vector_store %arg15[%c0_78, %c0_79], %228 {strides = array<i32>} : memref<2x128xf32, #tpu.memory_space<vmem>>, vector<1x16xf32>,
    %230 = vector.extract_strided_slice %227 {offsets = [1, 0], sizes = [1, 16], strides = [1, 1]} : vector<8x32xf32> to vector<1x16xf32>
    %c0_80 = arith.constant 0 : index
    %c16 = arith.constant 16 : index
    %231 = vector.load %arg15[%c0_80, %c16] : memref<2x128xf32, #tpu.memory_space<vmem>>, vector<1x16xf32>
    tpu.vector_store %arg15[%c0_80, %c16], %230 {strides = array<i32>} : memref<2x128xf32, #tpu.memory_space<vmem>>, vector<1x16xf32>,
    %232 = vector.extract_strided_slice %227 {offsets = [2, 0], sizes = [1, 16], strides = [1, 1]} : vector<8x32xf32> to vector<1x16xf32>
    %c0_81 = arith.constant 0 : index
    %c32 = arith.constant 32 : index
    %233 = vector.load %arg15[%c0_81, %c32] : memref<2x128xf32, #tpu.memory_space<vmem>>, vector<1x16xf32>
    tpu.vector_store %arg15[%c0_81, %c32], %232 {strides = array<i32>} : memref<2x128xf32, #tpu.memory_space<vmem>>, vector<1x16xf32>,
    %234 = vector.extract_strided_slice %227 {offsets = [3, 0], sizes = [1, 16], strides = [1, 1]} : vector<8x32xf32> to vector<1x16xf32>
    %c0_82 = arith.constant 0 : index
    %c48 = arith.constant 48 : index
    %235 = vector.load %arg15[%c0_82, %c48] : memref<2x128xf32, #tpu.memory_space<vmem>>, vector<1x16xf32>
    tpu.vector_store %arg15[%c0_82, %c48], %234 {strides = array<i32>} : memref<2x128xf32, #tpu.memory_space<vmem>>, vector<1x16xf32>,
    %236 = vector.extract_strided_slice %227 {offsets = [4, 0], sizes = [1, 16], strides = [1, 1]} : vector<8x32xf32> to vector<1x16xf32>
    %c0_83 = arith.constant 0 : index
    %c64 = arith.constant 64 : index
    %237 = vector.load %arg15[%c0_83, %c64] : memref<2x128xf32, #tpu.memory_space<vmem>>, vector<1x16xf32>
    tpu.vector_store %arg15[%c0_83, %c64], %236 {strides = array<i32>} : memref<2x128xf32, #tpu.memory_space<vmem>>, vector<1x16xf32>,
    %238 = vector.extract_strided_slice %227 {offsets = [5, 0], sizes = [1, 16], strides = [1, 1]} : vector<8x32xf32> to vector<1x16xf32>
    %c0_84 = arith.constant 0 : index
    %c80 = arith.constant 80 : index
    %239 = vector.load %arg15[%c0_84, %c80] : memref<2x128xf32, #tpu.memory_space<vmem>>, vector<1x16xf32>
    tpu.vector_store %arg15[%c0_84, %c80], %238 {strides = array<i32>} : memref<2x128xf32, #tpu.memory_space<vmem>>, vector<1x16xf32>,
    %240 = vector.extract_strided_slice %227 {offsets = [6, 0], sizes = [1, 16], strides = [1, 1]} : vector<8x32xf32> to vector<1x16xf32>
    %c0_85 = arith.constant 0 : index
    %c96 = arith.constant 96 : index
    %241 = vector.load %arg15[%c0_85, %c96] : memref<2x128xf32, #tpu.memory_space<vmem>>, vector<1x16xf32>
    tpu.vector_store %arg15[%c0_85, %c96], %240 {strides = array<i32>} : memref<2x128xf32, #tpu.memory_space<vmem>>, vector<1x16xf32>,
    %242 = vector.extract_strided_slice %227 {offsets = [7, 0], sizes = [1, 16], strides = [1, 1]} : vector<8x32xf32> to vector<1x16xf32>
    %c0_86 = arith.constant 0 : index
    %c112 = arith.constant 112 : index
    %243 = vector.load %arg15[%c0_86, %c112] : memref<2x128xf32, #tpu.memory_space<vmem>>, vector<1x16xf32>
    tpu.vector_store %arg15[%c0_86, %c112], %242 {strides = array<i32>} : memref<2x128xf32, #tpu.memory_space<vmem>>, vector<1x16xf32>,
    %244 = vector.extract_strided_slice %227 {offsets = [0, 16], sizes = [1, 16], strides = [1, 1]} : vector<8x32xf32> to vector<1x16xf32>
    %c1_87 = arith.constant 1 : index
    %c0_88 = arith.constant 0 : index
    %245 = vector.load %arg15[%c1_87, %c0_88] : memref<2x128xf32, #tpu.memory_space<vmem>>, vector<1x16xf32>
    tpu.vector_store %arg15[%c1_87, %c0_88], %244 {strides = array<i32>} : memref<2x128xf32, #tpu.memory_space<vmem>>, vector<1x16xf32>,
    %246 = vector.extract_strided_slice %227 {offsets = [1, 16], sizes = [1, 16], strides = [1, 1]} : vector<8x32xf32> to vector<1x16xf32>
    %c1_89 = arith.constant 1 : index
    %c16_90 = arith.constant 16 : index
    %247 = vector.load %arg15[%c1_89, %c16_90] : memref<2x128xf32, #tpu.memory_space<vmem>>, vector<1x16xf32>
    tpu.vector_store %arg15[%c1_89, %c16_90], %246 {strides = array<i32>} : memref<2x128xf32, #tpu.memory_space<vmem>>, vector<1x16xf32>,
    %248 = vector.extract_strided_slice %227 {offsets = [2, 16], sizes = [1, 16], strides = [1, 1]} : vector<8x32xf32> to vector<1x16xf32>
    %c1_91 = arith.constant 1 : index
    %c32_92 = arith.constant 32 : index
    %249 = vector.load %arg15[%c1_91, %c32_92] : memref<2x128xf32, #tpu.memory_space<vmem>>, vector<1x16xf32>
    tpu.vector_store %arg15[%c1_91, %c32_92], %248 {strides = array<i32>} : memref<2x128xf32, #tpu.memory_space<vmem>>, vector<1x16xf32>,
    %250 = vector.extract_strided_slice %227 {offsets = [3, 16], sizes = [1, 16], strides = [1, 1]} : vector<8x32xf32> to vector<1x16xf32>
    %c1_93 = arith.constant 1 : index
    %c48_94 = arith.constant 48 : index
    %251 = vector.load %arg15[%c1_93, %c48_94] : memref<2x128xf32, #tpu.memory_space<vmem>>, vector<1x16xf32>
    tpu.vector_store %arg15[%c1_93, %c48_94], %250 {strides = array<i32>} : memref<2x128xf32, #tpu.memory_space<vmem>>, vector<1x16xf32>,
    %252 = vector.extract_strided_slice %227 {offsets = [4, 16], sizes = [1, 16], strides = [1, 1]} : vector<8x32xf32> to vector<1x16xf32>
    %c1_95 = arith.constant 1 : index
    %c64_96 = arith.constant 64 : index
    %253 = vector.load %arg15[%c1_95, %c64_96] : memref<2x128xf32, #tpu.memory_space<vmem>>, vector<1x16xf32>
    tpu.vector_store %arg15[%c1_95, %c64_96], %252 {strides = array<i32>} : memref<2x128xf32, #tpu.memory_space<vmem>>, vector<1x16xf32>,
    %254 = vector.extract_strided_slice %227 {offsets = [5, 16], sizes = [1, 16], strides = [1, 1]} : vector<8x32xf32> to vector<1x16xf32>
    %c1_97 = arith.constant 1 : index
    %c80_98 = arith.constant 80 : index
    %255 = vector.load %arg15[%c1_97, %c80_98] : memref<2x128xf32, #tpu.memory_space<vmem>>, vector<1x16xf32>
    tpu.vector_store %arg15[%c1_97, %c80_98], %254 {strides = array<i32>} : memref<2x128xf32, #tpu.memory_space<vmem>>, vector<1x16xf32>,
    %256 = vector.extract_strided_slice %227 {offsets = [6, 16], sizes = [1, 16], strides = [1, 1]} : vector<8x32xf32> to vector<1x16xf32>
    %c1_99 = arith.constant 1 : index
    %c96_100 = arith.constant 96 : index
    %257 = vector.load %arg15[%c1_99, %c96_100] : memref<2x128xf32, #tpu.memory_space<vmem>>, vector<1x16xf32>
    tpu.vector_store %arg15[%c1_99, %c96_100], %256 {strides = array<i32>} : memref<2x128xf32, #tpu.memory_space<vmem>>, vector<1x16xf32>,
    %258 = vector.extract_strided_slice %227 {offsets = [7, 16], sizes = [1, 16], strides = [1, 1]} : vector<8x32xf32> to vector<1x16xf32>
    %c1_101 = arith.constant 1 : index
    %c112_102 = arith.constant 112 : index
    %259 = vector.load %arg15[%c1_101, %c112_102] : memref<2x128xf32, #tpu.memory_space<vmem>>, vector<1x16xf32>
    tpu.vector_store %arg15[%c1_101, %c112_102], %258 {strides = array<i32>} : memref<2x128xf32, #tpu.memory_space<vmem>>, vector<1x16xf32>,
    %c0_103 = arith.constant 0 : index
    %c0_104 = arith.constant 0 : index
    %260 = vector.load %arg15[%c0_103, %c0_104] : memref<2x128xf32, #tpu.memory_space<vmem>>, vector<2x128xf32>
    %c0_105 = arith.constant 0 : index
    %c0_106 = arith.constant 0 : index
    %261 = vector.load %arg10[%c0_105, %c0_106] : memref<128x128xf32, #tpu.memory_space<vmem>>, vector<128x128xf32>
    %cst_107 = arith.constant dense<0.000000e+00> : vector<2x128xf32>
    %262 = tpu.matmul %260, %261, %cst_107 {dimension_numbers = #tpu.dot_dimension_numbers<[1], [0], [0], [1], [0, 0, 1, 1], [], []>} : vector<2x128xf32>, vector<128x128xf32>, vector<2x128xf32> -> vector<2x128xf32>
    %c0_108 = arith.constant 0 : index
    %c0_109 = arith.constant 0 : index
    %263 = vector.load %arg11[%c0_108, %c0_109] : memref<1x128xf32, #tpu.memory_space<vmem>>, vector<1x128xf32>
    %264 = vector.broadcast %263 : vector<1x128xf32> to vector<2x128xf32>
    %265 = arith.addf %262, %264 : vector<2x128xf32>
    %cst_110 = arith.constant 0.000000e+00 : f32
    %266 = vector.broadcast %cst_110 : f32 to vector<2x128xf32>
    %267 = arith.maximumf %265, %266 : vector<2x128xf32>
    %c0_111 = arith.constant 0 : index
    %c0_112 = arith.constant 0 : index
    %268 = vector.load %arg12[%c0_111, %c0_112] : memref<128x128xf32, #tpu.memory_space<vmem>>, vector<128x128xf32>
    %cst_113 = arith.constant dense<0.000000e+00> : vector<2x128xf32>
    %269 = tpu.matmul %267, %268, %cst_113 {dimension_numbers = #tpu.dot_dimension_numbers<[1], [0], [0], [1], [0, 0, 1, 1], [], []>} : vector<2x128xf32>, vector<128x128xf32>, vector<2x128xf32> -> vector<2x128xf32>
    %c0_114 = arith.constant 0 : index
    %c0_115 = arith.constant 0 : index
    %270 = vector.load %arg13[%c0_114, %c0_115] : memref<1x128xf32, #tpu.memory_space<vmem>>, vector<1x128xf32>
    %271 = vector.broadcast %270 : vector<1x128xf32> to vector<2x128xf32>
    %272 = arith.addf %269, %271 : vector<2x128xf32>
    %c0_116 = arith.constant 0 : index
    %c0_117 = arith.constant 0 : index
    %273 = vector.load %arg14[%c0_116, %c0_117] : memref<2x128xf32, #tpu.memory_space<vmem>>, vector<2x128xf32>
    tpu.vector_store %arg14[%c0_116, %c0_117], %272 {strides = array<i32>} : memref<2x128xf32, #tpu.memory_space<vmem>>, vector<2x128xf32>,
    return
  }
}

</mosaic_0001>

<bundles_post_ra>
// kernel: _lambda_.1
= control target key start
LH: loop header
LB: loop body
LE: loop exit
PB: predicated region body
PF: predicated region fallthrough
CT: control target
= control target key end

     0   :  { %vm117_vm0 = vcmask 1043456   ;;  %v3559_v2 = vmov 0.0   ;;  %vm89_vm1 = vcmask 31744   ;;  %v2334_v7 = vmov 0   ;;  %s3544_s0 = inlined_call_operand.vmem [shape: f32[4,512], index: 0, kind: input, shape index: {}]   ;;  %s3545_s1 = inlined_call_operand.vmem [shape: f32[72,4], index: 1, kind: input, shape index: {}]   ;;  %s3546_s2 = inlined_call_operand.vmem [shape: f32[8,1], index: 2, kind: input, shape index: {}]   ;;  %s3547_s3 = inlined_call_operand.vmem [shape: f32[72,8], index: 3, kind: input, shape index: {}]   ;;  %s3548_s4 = inlined_call_operand.vmem [shape: f32[8,1], index: 4, kind: input, shape index: {}]   ;;  %s3549_s5 = inlined_call_operand.vmem [shape: f32[8,1], index: 5, kind: input, shape index: {}]   ;;  %s3550_s6 = inlined_call_operand.vmem [shape: f32[9,512], index: 6, kind: input, shape index: {}]   ;;  %s3551_s7 = inlined_call_operand.vmem [shape: f32[9,128], index: 7, kind: input, shape index: {}]   ;;  %s3552_s8 = inlined_call_operand.vmem [shape: f32[512,128], index: 8, kind: input, shape index: {}]   ;;  %s3553_s9 = inlined_call_operand.vmem [shape: f32[128,32], index: 9, kind: input, shape index: {}]   ;;  %s3554_s10 = inlined_call_operand.vmem [shape: f32[128,128], index: 10, kind: input, shape index: {}]   ;;  %s3555_s11 = inlined_call_operand.vmem [shape: f32[1,128], index: 11, kind: input, shape index: {}]   ;;  %s3556_s12 = inlined_call_operand.vmem [shape: f32[128,128], index: 12, kind: input, shape index: {}]   ;;  %s3557_s13 = inlined_call_operand.vmem [shape: f32[1,128], index: 13, kind: input, shape index: {}]   ;;  %s3558_s14 = inlined_call_operand.hbm [shape: f32[2,128], index: 14, kind: output, shape index: {}]  }
   0x1   :  { %v83_v0 = vld [vmem:[%s3544_s0] sm:$0xff]  ;;  %190 = vmatprep.mubr.f32.mxu0 %v3559_v2  ;;  %238 = vmatprep.mubr.f32.mxu1 %v3559_v2  ;;  %v84_v3 = vld [vmem:[%s3544_s0 + $0x8] sm:$0xff] }
   0x2   :  { %v87_v1 = vcombine.high %v83_v0, %v83_v0  ;;  %v74_v4 = vld [vmem:[%s3545_s1] sm:$0xff]  ;;  %v88_v6 = vcombine.high %v84_v3, %v84_v3  ;;  %2271 = vset.pattern.permute.xlu0 %v2334_v7  ;;  %2302 = vset.pattern.permute.xlu1 %v2334_v7 }
   0x3   :  { %v82_v5 = vld [vmem:[%s3545_s1 + $0x40] sm:$0xff] }
   0x4   :  { %1752 = vmatprep.subr.msk.mxu0 %vm117_vm0, %v87_v1  ;;  %2243 = vmatprep.subr.msk.mxu1 %vm117_vm0, %v87_v1 }
   0x5   :  { %1753 = vmatpush1.msk.msra.mxu0 %vm117_vm0, %v83_v0  ;;  %2244 = vmatpush1.msk.msra.mxu1 %vm117_vm0, %v83_v0 }
   0x6   :  { %19 = vsyncpa [#allocation4], 0  ;;  %1754 = vmatmul.mubr.msk.f32.vlgmr.msra.gmra.mrb[0].mxu0 %vm89_vm1, %v74_v4  ;;  %1762 = vmatmul.mubr.msk.f32.vlgmr.msra.gmra.mrb[0].mxu1 %vm89_vm1, %v82_v5  ;;  %v731_v8 = vld [vmem:[%s3546_s2] sm:$0xff]  ;;  %v75_v9 = vld [vmem:[%s3545_s1 + $0x8] sm:$0xff]  ;;  %s2335_s19 = smov 111   ;;  %s2336_s20 = smov 17  }
   0x7   :  { %1763 = vmatprep.subr.msk.mxu1 %vm117_vm0, %v88_v6  ;;  %309 = vmatprep.mubr.f32.mxu1 %v3559_v2  ;;  %v76_v10 = vld [vmem:[%s3545_s1 + $0x10] sm:$0xff]  ;;  %v77_v11 = vld [vmem:[%s3545_s1 + $0x18] sm:$0xff]  ;;  %v78_v12 = vld [vmem:[%s3545_s1 + $0x20] sm:$0xff]  ;;  %s2338_s0 = smov 15   ;;  %s2339_s21 = smov 1   ;;  %vm2343_vm10 = vmmov 0  }
   0x8   :  { %1764 = vmatpush1.msk.msra.mxu1 %vm117_vm0, %v84_v3  ;;  %196 = vmatprep.mubr.f32.mxu0 %v3559_v2  ;;  %v79_v13 = vld [vmem:[%s3545_s1 + $0x28] sm:$0xff]  ;;  %v80_v14 = vld [vmem:[%s3545_s1 + $0x30] sm:$0xff]  ;;  %v81_v15 = vld [vmem:[%s3545_s1 + $0x38] sm:$0xff]  ;;  %s2337_s1 = smov 16   ;;  %s2340_s22 = smov 127   ;;  %vm1008_vm11 = vcmask 64512  }
   0x9   :  { %734 = vperm.xlu0 %2271, %v731_v8   ;;  %s2341_s23 = smov 113   ;;  %s2342_s2 = smov 112   ;;  %v841_v52 = vld [vmem:[%s3552_s8 + $0x180] sm:$0xff]  ;;  %v842_v53 = vld [vmem:[%s3552_s8 + $0x188] sm:$0xff]  ;;  %v843_v63 = vld [vmem:[%s3552_s8 + $0x190] sm:$0xff]  ;;  %vm1495_vm12 = vcmask 122880  }
   0xa   :  { %1765 = vmatmul.mubr.msk.f32.vlgmr.msra.gmra.mrb[2].mxu1 %vm89_vm1, %v74_v4  ;;  %1755 = vmatmul.mubr.msk.f32.gmra.mrb[2].mxu0 %vm89_vm1, %v75_v9  ;;  %v825_v54 = vld [vmem:[%s3552_s8 + $0x100] sm:$0xff]  ;;  %v2139_v55 = vpack.c.bf16 %v842_v53, %v841_v52  ;;  %v826_v56 = vld [vmem:[%s3552_s8 + $0x108] sm:$0xff]  ;;  %v844_v1 = vld [vmem:[%s3552_s8 + $0x198] sm:$0xff]  ;;  %s2345_s24 = smov 8   ;;  %s2347_s25 = smov 121   ;;  %vm1501_vm13 = vcmask 255105  }
   0xb   :  { %315 = vmatprep.mubr.f32.mxu1 %v3559_v2  ;;  %202 = vmatprep.mubr.f32.mxu0 %v3559_v2  ;;  %v809_v57 = vld [vmem:[%s3552_s8 + $0x80] sm:$0xff]  ;;  %v810_v58 = vld [vmem:[%s3552_s8 + $0x88] sm:$0xff]  ;;  %v2141_v59 = vpack.c.bf16 %v826_v56, %v825_v54  ;;  %v811_v3 = vld [vmem:[%s3552_s8 + $0x90] sm:$0xff]  ;;  %s2348_s26 = smov 120   ;;  %s2349_s27 = smov 119   ;;  %vm1506_vm14 = vcmask 387330  }
   0xc   :  { %v2107_v60 = vpack.c.bf16 %v810_v58, %v809_v57  ;;  %v793_v61 = vld [vmem:[%s3552_s8] sm:$0xff]  ;;  %v794_v62 = vld [vmem:[%s3552_s8 + $0x8] sm:$0xff]  ;;  %2140 = vmatprep.subr.bf16.mxu1 %v2139_v55  ;;  %v812_v4 = vld [vmem:[%s3552_s8 + $0x98] sm:$0xff]  ;;  %s2354_s18 = smov 64   ;;  %vm1511_vm15 = vcmask 519555   ;;  %vm1516_vm0 = vcmask 651780  }
   0xd   :  { %v2109_v0 = vpack.c.bf16 %v794_v62, %v793_v61  ;;  %2142 = vmatpush3.bf16.msra.mxu1 %v2141_v59  ;;  %v2111_v6 = vpack.c.bf16 %v812_v4, %v811_v3  ;;  %v827_v7 = vld [vmem:[%s3552_s8 + $0x110] sm:$0xff]  ;;  %v828_v8 = vld [vmem:[%s3552_s8 + $0x118] sm:$0xff] }
   0xe   :  { %1766 = vmatmul.mubr.msk.f32.gmra.mrb[4].mxu1 %vm89_vm1, %v75_v9  ;;  %1756 = vmatmul.mubr.msk.f32.gmra.mrb[4].mxu0 %vm89_vm1, %v76_v10  ;;  %v795_v9 = vld [vmem:[%s3552_s8 + $0x10] sm:$0xff] }
   0xf   :  { %321 = vmatprep.mubr.f32.mxu1 %v3559_v2  ;;  %208 = vmatprep.mubr.f32.mxu0 %v3559_v2  ;;  %v2661_v53 = vld [vmem:[%s3550_s6] ss:$8 sm:$0xf]  ;;  %v2668_v56 = vld [vmem:[%s3550_s6 + $0x1] ss:$8 sm:$0xf] }
  0x10   :  { %2108 = vmatprep.subr.bf16.mxu0 %v2107_v60  ;;  %v2682_v62 = vld [vmem:[%s3550_s6 + $0x2] ss:$8 sm:$0xf] }
  0x11   :  { %2110 = vmatpush3.bf16.msra.mxu0 %v2109_v0 }
  0x12   :  { %1767 = vmatmul.mubr.msk.f32.gmra.mrb[6].mxu1 %vm89_vm1, %v76_v10  ;;  %1757 = vmatmul.mubr.msk.f32.gmra.mrb[6].mxu0 %vm89_vm1, %v77_v11  ;;  %v2145_v10 = vpack.c.bf16 %v828_v8, %v827_v7  ;;  %v2702_v7 = vld [vmem:[%s3550_s6 + $0x3] ss:$8 sm:$0xf] }
  0x13   :  { %214 = vmatprep.mubr.f32.mxu0 %v3559_v2  ;;  %327 = vmatprep.mubr.f32.mxu1 %v3559_v2 }
  0x14   :  { %2112 = vmatprep.subr.bf16.mxu0 %v2111_v6 }
  0x16   :  { %1758 = vmatmul.mubr.msk.f32.gmra.mrb[8].mxu0 %vm89_vm1, %v78_v12  ;;  %1768 = vmatmul.mubr.msk.f32.gmra.mrb[8].mxu1 %vm89_vm1, %v77_v11  ;;  %v796_v11 = vld [vmem:[%s3552_s8 + $0x18] sm:$0xff] }
  0x17   :  { %220 = vmatprep.mubr.f32.mxu0 %v3559_v2  ;;  %333 = vmatprep.mubr.f32.mxu1 %v3559_v2 }
  0x1a   :  { %1759 = vmatmul.mubr.msk.f32.gmra.mrb[10].mxu0 %vm89_vm1, %v79_v13  ;;  %1769 = vmatmul.mubr.msk.f32.gmra.mrb[10].mxu1 %vm89_vm1, %v78_v12  ;;  %v845_v12 = vld [vmem:[%s3552_s8 + $0x1a0] sm:$0xff] }
  0x1b   :  { %339 = vmatprep.mubr.f32.mxu1 %v3559_v2  ;;  %226 = vmatprep.mubr.f32.mxu0 %v3559_v2 }
  0x1e   :  { %1770 = vmatmul.mubr.msk.f32.gmra.mrb[12].mxu1 %vm89_vm1, %v79_v13  ;;  %1760 = vmatmul.mubr.msk.f32.gmra.mrb[12].mxu0 %vm89_vm1, %v80_v14  ;;  %v846_v13 = vld [vmem:[%s3552_s8 + $0x1a8] sm:$0xff] }
  0x1f   :  { %345 = vmatprep.mubr.f32.mxu1 %v3559_v2  ;;  %232 = vmatprep.mubr.f32.mxu0 %v3559_v2 }
  0x22   :  { %1771 = vmatmul.mubr.msk.f32.gmra.mrb[14].mxu1 %vm89_vm1, %v80_v14  ;;  %1761 = vmatmul.mubr.msk.f32.gmra.mrb[14].mxu0 %vm89_vm1, %v81_v15  ;;  %v2113_v14 = vpack.c.bf16 %v796_v11, %v795_v9 }
  0x23   :  { %351 = vmatprep.mubr.f32.mxu1 %v3559_v2 }
  0x24   :  { %2114 = vmatpush3.bf16.msra.mxu0 %v2113_v14 }
  0x26   :  { %1772 = vmatmul.mubr.msk.f32.gmra.mrb[16].mxu1 %vm89_vm1, %v81_v15  ;;  %v2147_v15 = vpack.c.bf16 %v846_v13, %v845_v12 }
  0x27   :  { %357 = vmatprep.mubr.f32.mxu1 %v3559_v2 }
  0x2a   :  { %1773 = vmatmul.mubr.msk.f32.gmra.mrb[18].mxu1 %vm89_vm1, %v82_v5  ;;  %v2143_v5 = vpack.c.bf16 %v844_v1, %v843_v63  ;;  %vm1521_vm1 = vcmask 784005  }
  0x2c   :  { %2144 = vmatprep.subr.bf16.mxu1 %v2143_v5 }
  0x2d   :  { %2146 = vmatpush3.bf16.msra.mxu1 %v2145_v10 }
  0x2e   :  { %2148 = vmatprep.subr.bf16.mxu1 %v2147_v15 }
  0xd9   :  { %v192_v16 = vpop.f32.mrb[0].mxu0  ;;  %v240_v17 = vpop.f32.mrb[0].mxu1 }
  0xda   :  { %689 = vrot.lane.b32.xlu1 %v240_v17, %s2335_s19  ;;  %v242_v18 = vpop.f32.mrb[1].mxu1  ;;  %364 = vrot.lane.b32.xlu0 %v192_v16, %s2336_s20  ;;  %v194_v19 = vpop.f32.mrb[1].mxu0  ;;  %v813_v16 = vld [vmem:[%s3552_s8 + $0xa0] sm:$0xff]  ;;  %v814_v17 = vld [vmem:[%s3552_s8 + $0xa8] sm:$0xff] }
  0xdd   :  { %v311_v20 = vpop.f32.mrb[2].mxu1  ;;  %v198_v21 = vpop.f32.mrb[2].mxu0 }
  0xde   :  { %691 = vrot.lane.b32.xlu1 %v242_v18, %s2335_s19  ;;  %366 = vrot.lane.b32.xlu0 %v194_v19, %s2336_s20  ;;  %v313_v22 = vpop.f32.mrb[3].mxu1  ;;  %v200_v23 = vpop.f32.mrb[3].mxu0  ;;  %v829_v18 = vld [vmem:[%s3552_s8 + $0x120] sm:$0xff]  ;;  %v2115_v19 = vpack.c.bf16 %v814_v17, %v813_v16 }
  0xdf   :  { %v2726_v17 = vld [vmem:[%s3550_s6 + $0x5] ss:$8 sm:$0xf] }
  0xe0   :  { %2116 = vmatprep.subr.bf16.mxu0 %v2115_v19  ;;  %v2739_v19 = vld [vmem:[%s3550_s6 + $0x6] ss:$8 sm:$0xf] }
  0xe1   :  { %v317_v24 = vpop.f32.mrb[4].mxu1  ;;  %v204_v25 = vpop.f32.mrb[4].mxu0 }
  0xe2   :  { %368 = vrot.lane.b32.xlu1 %v311_v20, %s2336_s20  ;;  %408 = vrot.lane.b32.xlu0 %v198_v21, %s2337_s1  ;;  %v319_v26 = vpop.f32.mrb[5].mxu1  ;;  %v206_v27 = vpop.f32.mrb[5].mxu0  ;;  %v830_v20 = vld [vmem:[%s3552_s8 + $0x128] sm:$0xff]  ;;  %v797_v21 = vld [vmem:[%s3552_s8 + $0x20] sm:$0xff] }
  0xe5   :  { %v323_v28 = vpop.f32.mrb[6].mxu1  ;;  %v210_v29 = vpop.f32.mrb[6].mxu0 }
  0xe6   :  { %370 = vrot.lane.b32.xlu1 %v313_v22, %s2336_s20  ;;  %412 = vrot.lane.b32.xlu0 %v317_v24, %s2337_s1  ;;  %v325_v30 = vpop.f32.mrb[7].mxu1  ;;  %v212_v31 = vpop.f32.mrb[7].mxu0  ;;  %v798_v22 = vld [vmem:[%s3552_s8 + $0x28] sm:$0xff] }
  0xe7   :  { %v2117_v24 = vpack.c.bf16 %v798_v22, %v797_v21 }
  0xe9   :  { %v329_v32 = vpop.f32.mrb[8].mxu1  ;;  %v2514_v33 = vpop.f32.mrb[8].mxu0  ;;  %2118 = vmatpush3.bf16.msra.mxu0 %v2117_v24 }
  0xea   :  { %410 = vrot.lane.b32.xlu1 %v200_v23, %s2337_s1  ;;  %450 = vrot.lane.b32.xlu0 %v204_v25, %s2338_s0  ;;  %v2517_v34 = vpop.f32.mrb[9].mxu0  ;;  %v331_v35 = vpop.f32.mrb[9].mxu1  ;;  %v2149_v23 = vpack.c.bf16 %v830_v20, %v829_v18 }
  0xeb   :  { %v2610_v25 = vpop.permute.xlu0 %734 }
  0xec   :  { %2150 = vmatpush3.bf16.msra.mxu1 %v2149_v23 }
  0xed   :  { %v222_v36 = vpop.f32.mrb[10].mxu0  ;;  %v2519_v37 = vpop.f32.mrb[10].mxu1 }
  0xee   :  { %414 = vrot.lane.b32.xlu1 %v319_v26, %s2337_s1  ;;  %454 = vrot.lane.b32.xlu0 %v323_v28, %s2338_s0  ;;  %v2522_v38 = vpop.f32.mrb[11].mxu1  ;;  %v224_v39 = vpop.f32.mrb[11].mxu0 }
  0xf1   :  { %v341_v40 = vpop.f32.mrb[12].mxu1  ;;  %v228_v41 = vpop.f32.mrb[12].mxu0 }
  0xf2   :  { %452 = vrot.lane.b32.xlu1 %v206_v27, %s2338_s0  ;;  %492 = vrot.lane.b32.xlu0 %v210_v29, %s2339_s21  ;;  %v343_v42 = vpop.f32.mrb[13].mxu1  ;;  %v230_v43 = vpop.f32.mrb[13].mxu0 }
  0xf5   :  { %v347_v44 = vpop.f32.mrb[14].mxu1  ;;  %v234_v45 = vpop.f32.mrb[14].mxu0 }
  0xf6   :  { %456 = vrot.lane.b32.xlu1 %v325_v30, %s2338_s0  ;;  %496 = vrot.lane.b32.xlu0 %v329_v32, %s2339_s21  ;;  %v349_v46 = vpop.f32.mrb[15].mxu1  ;;  %v236_v47 = vpop.f32.mrb[15].mxu0  ;;  %s2356_s0 = smov [#allocation3]  }
  0xf9   :  { %v353_v48 = vpop.f32.mrb[16].mxu1 }
  0xfa   :  { %494 = vrot.lane.b32.xlu1 %v212_v31, %s2339_s21  ;;  %563 = vrot.lane.b32.xlu0 %v222_v36, %s2340_s22  ;;  %v355_v49 = vpop.f32.mrb[17].mxu1  ;;  %v372_v36 = vlaneseq }
  0xfc   :  { %v2656_v52 = vand.u32 127, %v372_v36 }
  0xfd   :  { %v359_v50 = vpop.f32.mrb[18].mxu1 }
  0xfe   :  { %498 = vrot.lane.b32.xlu1 %v331_v35, %s2339_s21  ;;  %567 = vrot.lane.b32.xlu0 %v341_v40, %s2340_s22  ;;  %v361_v51 = vpop.f32.mrb[19].mxu1  ;;  %vm374_vm2 = vcmp.lt.s32.totalorder %v2656_v52, 17  ;;  %vm416_vm3 = vcmp.lt.s32.totalorder %v2656_v52, 16  ;;  %vm458_vm4 = vcmp.lt.s32.totalorder %v2656_v52, 15  ;;  %vm500_vm5 = vcmp.lt.s32.totalorder %v2656_v52, 1 }
  0xff   :  { %vm571_vm6 = vcmp.lt.s32.totalorder %v2656_v52, 127  ;;  %vm613_vm7 = vcmp.lt.s32.totalorder %v2656_v52, 113  ;;  %vm697_vm8 = vcmp.lt.s32.totalorder %v2656_v52, 111  ;;  %vm655_vm9 = vcmp.lt.s32.totalorder %v2656_v52, 112 }
 0x102   :  { %565 = vrot.lane.b32.xlu1 %v224_v39, %s2340_s22  ;;  %605 = vrot.lane.b32.xlu0 %v228_v41, %s2341_s23  ;;  %v381_v41 = vshrl.u32 %v372_v36, 7 }
 0x106   :  { %569 = vrot.lane.b32.xlu1 %v343_v42, %s2340_s22  ;;  %609 = vrot.lane.b32.xlu0 %v347_v44, %s2341_s23  ;;  %v2636_v44 = vsub.s32 0, %v381_v41 }
 0x108   :  { %v383_v1 = vrot.slane %v2661_v53, %v2636_v44  ;;  %v425_v6 = vrot.slane %v2668_v56, %v2636_v44  ;;  %v467_v15 = vrot.slane %v2682_v62, %v2636_v44  ;;  %v509_v21 = vrot.slane %v2702_v7, %v2636_v44 }
 0x10a   :  { %607 = vrot.lane.b32.xlu1 %v230_v43, %s2341_s23  ;;  %647 = vrot.lane.b32.xlu0 %v234_v45, %s2342_s2  ;;  %v2638_v45 = vsub.s32 1, %v381_v41 }
 0x10c   :  { %v387_v63 = vrot.slane %v2661_v53, %v2638_v45  ;;  %v429_v4 = vrot.slane %v2668_v56, %v2638_v45  ;;  %v471_v9 = vrot.slane %v2682_v62, %v2638_v45 }
 0x10e   :  { %611 = vrot.lane.b32.xlu1 %v349_v46, %s2341_s23  ;;  %651 = vrot.lane.b32.xlu0 %v353_v48, %s2342_s2  ;;  %v1747_v48 = vld [vmem:[%s3550_s6 + $0x4] ss:$8 sm:$0xf]  ;;  %s1736_s23 = sshll.u32 %s2356_s0, 4  ;;  %s1737_s23 = int_to_ptr.vmem [resolvable:$true] %s1736_s23 }
 0x10f   :  { %v538_v54 = vrot.slane %v1747_v48, %v2636_v44  ;;  %v542_v55 = vrot.slane %v1747_v48, %v2638_v45  ;;  %p2314_p1 = scmp.lt.s32.totalorder %s1737_s23, %s1737_s23 }
 0x111   :  { %v2714_v13 = vmul.f32 %v538_v54, %v2514_v33  ;;  %v2717_v14 = vmul.f32 %v542_v55, %v2517_v34  ;;  %v513_v33 = vrot.slane %v2702_v7, %v2638_v45 }
 0x112   :  { %693 = vrot.lane.b32.xlu0 %v359_v50, %s2335_s19  ;;  %649 = vrot.lane.b32.xlu1 %v236_v47, %s2342_s2  ;;  %v2649_v50 = vsub.s32 3, %v381_v41 }
 0x114   :  { %v550_v60 = vrot.slane %v1747_v48, %v2649_v50  ;;  %v395_v3 = vrot.slane %v2661_v53, %v2649_v50  ;;  %v437_v8 = vrot.slane %v2668_v56, %v2649_v50  ;;  %v479_v16 = vrot.slane %v2682_v62, %v2649_v50 }
 0x115   :  { %v521_v22 = vrot.slane %v2702_v7, %v2649_v50 }
 0x116   :  { %653 = vrot.lane.b32.xlu1 %v355_v49, %s2342_s2  ;;  %v2647_v49 = vsub.s32 2, %v381_v41  ;;  %v2742_v20 = vmul.f32 %v550_v60, %v2522_v38  ;;  %v580_v38 = vrot.slane %v2726_v17, %v2636_v44  ;;  %v584_v41 = vrot.slane %v2726_v17, %v2638_v45 }
 0x118   :  { %v546_v59 = vrot.slane %v1747_v48, %v2647_v49  ;;  %v391_v0 = vrot.slane %v2661_v53, %v2647_v49  ;;  %v433_v5 = vrot.slane %v2668_v56, %v2647_v49  ;;  %v475_v10 = vrot.slane %v2682_v62, %v2647_v49 }
 0x119   :  { %v517_v34 = vrot.slane %v2702_v7, %v2647_v49  ;;  %v588_v48 = vrot.slane %v2726_v17, %v2647_v49  ;;  %v630_v53 = vrot.slane %v2739_v19, %v2647_v49 }
 0x11a   :  { %695 = vrot.lane.b32.xlu1 %v361_v51, %s2335_s19  ;;  %v2654_v51 = vld [vmem:[%s3550_s6 + $0x20] ss:$8 sm:$0xf]  ;;  %v2729_v18 = vmul.f32 %v546_v59, %v2519_v37  ;;  %v622_v59 = vrot.slane %v2739_v19, %v2636_v44 }
 0x14c   :  { %v2612_v26 = vpop.permute.xlu1 %689  ;;  %v2614_v27 = vpop.permute.xlu0 %364 }
 0x150   :  { %v2616_v28 = vpop.permute.xlu1 %691  ;;  %v2618_v29 = vpop.permute.xlu0 %366 }
 0x151   :  { %v377_v23 = vsel %vm374_vm2, %v2614_v27, %v2618_v29 }
 0x152   :  { %v401_v2 = vmul.f32 %v387_v63, %v377_v23 }
 0x154   :  { %v2620_v30 = vpop.permute.xlu1 %368  ;;  %v2622_v31 = vpop.permute.xlu0 %408 }
 0x155   :  { %v376_v56 = vsel %vm374_vm2, %v2618_v29, %v2620_v30 }
 0x158   :  { %v2624_v32 = vpop.permute.xlu1 %370  ;;  %v2626_v35 = vpop.permute.xlu0 %412 }
 0x159   :  { %v378_v54 = vsel %vm374_vm2, %v2624_v32, %v2614_v27 }
 0x15a   :  { %v400_v63 = vmul.f32 %v383_v1, %v378_v54 }
 0x15c   :  { %v2628_v39 = vpop.permute.xlu1 %410  ;;  %v2630_v40 = vpop.permute.xlu0 %450 }
 0x15d   :  { %v418_v60 = vsel %vm416_vm3, %v2628_v39, %v2626_v35  ;;  %v419_v27 = vsel %vm416_vm3, %v2622_v31, %v2628_v39  ;;  %v375_v39 = vsel %vm374_vm2, %v2620_v30, %v2624_v32  ;;  %vm1526_vm2 = vcmask 916230  }
 0x15e   :  { %v444_v23 = vmul.f32 %v433_v5, %v418_v60  ;;  %v403_v5 = vmul.f32 %v395_v3, %v375_v39  ;;  %v2837_v3 = vld [vmem:[%s3550_s6 + $0x7] ss:$8 sm:$0xf]  ;;  %s2353_s6 = smov 80  }
 0x160   :  { %v2632_v42 = vpop.permute.xlu1 %414  ;;  %v2634_v43 = vpop.permute.xlu0 %454 }
 0x161   :  { %v420_v37 = vsel %vm416_vm3, %v2632_v42, %v2622_v31  ;;  %v417_v61 = vsel %vm416_vm3, %v2626_v35, %v2632_v42  ;;  %v443_v42 = vmul.f32 %v429_v4, %v419_v27  ;;  %v402_v4 = vmul.f32 %v391_v0, %v376_v56 }
 0x162   :  { %v442_v62 = vmul.f32 %v425_v6, %v420_v37  ;;  %v445_v32 = vmul.f32 %v437_v8, %v417_v61  ;;  %v634_v0 = vrot.slane %v2739_v19, %v2649_v50  ;;  %vm1531_vm3 = vcmask 1048455  }
 0x163   :  { %v447_v8 = vadd.f32 %v443_v42, %v401_v2 }
 0x164   :  { %v2640_v46 = vpop.permute.xlu1 %452  ;;  %v2642_v47 = vpop.permute.xlu0 %492  ;;  %v446_v1 = vadd.f32 %v442_v62, %v400_v63 }
 0x165   :  { %v461_v29 = vsel %vm458_vm4, %v2630_v40, %v2640_v46  ;;  %v460_v7 = vsel %vm458_vm4, %v2640_v46, %v2634_v43 }
 0x166   :  { %v485_v54 = vmul.f32 %v471_v9, %v461_v29  ;;  %v448_v9 = vadd.f32 %v444_v23, %v402_v4  ;;  %v668_v23 = vrot.slane %v2837_v3, %v2638_v45 }
 0x168   :  { %v2670_v57 = vpop.permute.xlu1 %456  ;;  %v2672_v58 = vpop.permute.xlu0 %496 }
 0x169   :  { %v462_v55 = vsel %vm458_vm4, %v2670_v57, %v2630_v40  ;;  %v459_v30 = vsel %vm458_vm4, %v2634_v43, %v2670_v57 }
 0x16a   :  { %v484_v6 = vmul.f32 %v467_v15, %v462_v55  ;;  %v486_v55 = vmul.f32 %v475_v10, %v460_v7  ;;  %v487_v60 = vmul.f32 %v479_v16, %v459_v30  ;;  %v449_v10 = vadd.f32 %v445_v32, %v403_v5 }
 0x16b   :  { %v672_v32 = vrot.slane %v2837_v3, %v2647_v49 }
 0x16c   :  { %v495_v11 = vpop.permute.xlu1 %494  ;;  %v2711_v12 = vpop.permute.xlu0 %563  ;;  %v488_v43 = vadd.f32 %v484_v6, %v446_v1  ;;  %v490_v56 = vadd.f32 %v486_v55, %v448_v9  ;;  %v491_v27 = vadd.f32 %v487_v60, %v449_v10  ;;  %v3561_v55 = vrot.slane %v2739_v19, %v2638_v45 }
 0x16d   :  { %v503_v40 = vsel %vm500_vm5, %v2642_v47, %v495_v11  ;;  %v502_v46 = vsel %vm500_vm5, %v495_v11, %v2672_v58  ;;  %v3562_v60 = vrot.slane %v2654_v51, %v2636_v44 }
 0x16e   :  { %v528_v11 = vmul.f32 %v517_v34, %v502_v46  ;;  %v664_v34 = vrot.slane %v2837_v3, %v2636_v44 }
 0x170   :  { %v499_v24 = vpop.permute.xlu1 %498  ;;  %v2756_v36 = vpop.permute.xlu0 %567  ;;  %v532_v29 = vadd.f32 %v528_v11, %v490_v56  ;;  %v816_v11 = vld [vmem:[%s3552_s8 + $0xb8] sm:$0xff]  ;;  %v799_v56 = vld [vmem:[%s3552_s8 + $0x30] sm:$0xff] }
 0x171   :  { %v504_v31 = vsel %vm500_vm5, %v499_v24, %v2642_v47  ;;  %v501_v57 = vsel %vm500_vm5, %v2672_v58, %v499_v24  ;;  %v489_v58 = vadd.f32 %v485_v54, %v447_v8 }
 0x172   :  { %v526_v15 = vmul.f32 %v509_v21, %v504_v31  ;;  %v527_v21 = vmul.f32 %v513_v33, %v503_v40  ;;  %v529_v24 = vmul.f32 %v521_v22, %v501_v57  ;;  %v710_v33 = vrot.slane %v2654_v51, %v2638_v45  ;;  %v817_v45 = vld [vmem:[%s3552_s8 + $0xc0] sm:$0xff] }
 0x173   :  { %v3563_v57 = vrot.slane %v2726_v17, %v2649_v50 }
 0x174   :  { %v566_v37 = vpop.permute.xlu1 %565  ;;  %v2808_v35 = vpop.permute.xlu0 %605  ;;  %v530_v16 = vadd.f32 %v526_v15, %v488_v43  ;;  %v531_v31 = vadd.f32 %v527_v21, %v489_v58 }
 0x175   :  { %v574_v2 = vsel %vm571_vm6, %v2711_v12, %v566_v37  ;;  %v573_v22 = vsel %vm571_vm6, %v566_v37, %v2756_v36  ;;  %v700_v37 = vsel %vm697_vm8, %v2612_v26, %v2616_v28 }
 0x176   :  { %v559_v6 = vadd.f32 %v2714_v13, %v530_v16  ;;  %v597_v42 = vmul.f32 %v580_v38, %v574_v2  ;;  %v598_v13 = vmul.f32 %v584_v41, %v573_v22  ;;  %v560_v5 = vadd.f32 %v2717_v14, %v531_v31  ;;  %v848_v2 = vld [vmem:[%s3552_s8 + $0x1b8] sm:$0xff] }
 0x177   :  { %v676_v41 = vrot.slane %v2837_v3, %v2649_v50  ;;  %v723_v43 = vmul.f32 %v3562_v60, %v700_v37 }
 0x178   :  { %v570_v61 = vpop.permute.xlu1 %569  ;;  %v610_v47 = vpop.permute.xlu0 %609  ;;  %v601_v46 = vadd.f32 %v597_v42, %v559_v6  ;;  %v602_v8 = vadd.f32 %v598_v13, %v560_v5  ;;  %v801_v5 = vld [vmem:[%s3552_s8 + $0x40] sm:$0xff] }
 0x179   :  { %v572_v39 = vsel %vm571_vm6, %v2756_v36, %v570_v61  ;;  %v533_v36 = vadd.f32 %v529_v24, %v491_v27  ;;  %v575_v38 = vsel %vm571_vm6, %v570_v61, %v2711_v12  ;;  %v714_v12 = vrot.slane %v2654_v51, %v2647_v49  ;;  %v800_v27 = vld [vmem:[%s3552_s8 + $0x38] sm:$0xff] }
 0x17a   :  { %v599_v1 = vmul.f32 %v588_v48, %v572_v39  ;;  %v561_v48 = vadd.f32 %v2729_v18, %v532_v29  ;;  %v600_v61 = vmul.f32 %v3563_v57, %v575_v38  ;;  %v718_v18 = vrot.slane %v2654_v51, %v2649_v50  ;;  %v849_v38 = vld [vmem:[%s3552_s8 + $0x1c0] sm:$0xff]  ;;  %v835_v50 = vld [vmem:[%s3552_s8 + $0x150] sm:$0xff]  ;;  %v836_v51 = vld [vmem:[%s3552_s8 + $0x158] sm:$0xff] }
 0x17b   :  { %v562_v19 = vadd.f32 %v2742_v20, %v533_v36  ;;  %v815_v20 = vld [vmem:[%s3552_s8 + $0xb0] sm:$0xff]  ;;  %v2121_v39 = vpack.c.bf16 %v800_v27, %v799_v56 }
 0x17c   :  { %v608_v62 = vpop.permute.xlu1 %607  ;;  %v2844_v7 = vpop.permute.xlu0 %647  ;;  %v603_v21 = vadd.f32 %v599_v1, %v561_v48  ;;  %v2119_v24 = vpack.c.bf16 %v816_v11, %v815_v20 }
 0x17d   :  { %v616_v63 = vsel %vm613_vm7, %v2808_v35, %v608_v62  ;;  %v615_v30 = vsel %vm613_vm7, %v608_v62, %v610_v47  ;;  %v604_v62 = vadd.f32 %v600_v61, %v562_v19  ;;  %v819_v19 = vld [vmem:[%s3552_s8 + $0xd0] sm:$0xff] }
 0x17e   :  { %v639_v40 = vmul.f32 %v622_v59, %v616_v63  ;;  %v640_v59 = vmul.f32 %v3561_v55, %v615_v30  ;;  %v832_v63 = vld [vmem:[%s3552_s8 + $0x138] sm:$0xff]  ;;  %2120 = vmatprep.subr.bf16.mxu0 %v2119_v24  ;;  %v853_v24 = vld [vmem:[%s3552_s8 + $0x1e0] sm:$0xff] }
 0x17f   :  { %2122 = vmatpush3.bf16.msra.mxu0 %v2121_v39 }
 0x180   :  { %v612_v15 = vpop.permute.xlu1 %611  ;;  %v652_v4 = vpop.permute.xlu0 %651  ;;  %v643_v3 = vadd.f32 %v639_v40, %v601_v46 }
 0x181   :  { %v614_v54 = vsel %vm613_vm7, %v610_v47, %v612_v15  ;;  %v617_v14 = vsel %vm613_vm7, %v612_v15, %v2808_v35 }
 0x182   :  { %v641_v47 = vmul.f32 %v630_v53, %v614_v54  ;;  %v642_v35 = vmul.f32 %v634_v0, %v617_v14  ;;  %v847_v0 = vld [vmem:[%s3552_s8 + $0x1b0] sm:$0xff]  ;;  %v802_v54 = vld [vmem:[%s3552_s8 + $0x48] sm:$0xff] }
 0x183   :  { %v2151_v22 = vpack.c.bf16 %v848_v2, %v847_v0  ;;  %v2125_v55 = vpack.c.bf16 %v802_v54, %v801_v5  ;;  %v3564_v5 = vmov 0.0  }
 0x184   :  { %v694_v9 = vpop.permute.xlu0 %693  ;;  %v650_v10 = vpop.permute.xlu1 %649  ;;  %v645_v31 = vadd.f32 %v641_v47, %v603_v21  ;;  %v646_v36 = vadd.f32 %v642_v35, %v604_v62  ;;  %v820_v21 = vld [vmem:[%s3552_s8 + $0xd8] sm:$0xff]  ;;  %v854_v62 = vld [vmem:[%s3552_s8 + $0x1e8] sm:$0xff] }
 0x185   :  { %v699_v44 = vsel %vm697_vm8, %v2616_v28, %v694_v9  ;;  %v657_v17 = vsel %vm655_vm9, %v650_v10, %v652_v4  ;;  %v658_v53 = vsel %vm655_vm9, %v2844_v7, %v650_v10  ;;  %v644_v28 = vadd.f32 %v640_v59, %v602_v8  ;;  %2152 = vmatprep.subr.bf16.mxu1 %v2151_v22  ;;  %v806_v22 = vld [vmem:[%s3552_s8 + $0x68] sm:$0xff] }
 0x186   :  { %v681_v16 = vmul.f32 %v664_v34, %v658_v53  ;;  %v682_v58 = vmul.f32 %v668_v23, %v657_v17  ;;  %v831_v34 = vld [vmem:[%s3552_s8 + $0x130] sm:$0xff]  ;;  %v724_v29 = vmul.f32 %v710_v33, %v699_v44  ;;  %v818_v33 = vld [vmem:[%s3552_s8 + $0xc8] sm:$0xff]  ;;  %v852_v44 = vld [vmem:[%s3552_s8 + $0x1d8] sm:$0xff]  ;;  %v2127_v49 = vpack.c.bf16 %v820_v21, %v819_v19 }
 0x187   :  { %v2153_v37 = vpack.c.bf16 %v832_v63, %v831_v34  ;;  %v2123_v46 = vpack.c.bf16 %v818_v33, %v817_v45  ;;  %v803_v17 = vld [vmem:[%s3552_s8 + $0x50] sm:$0xff]  ;;  %v804_v53 = vld [vmem:[%s3552_s8 + $0x58] sm:$0xff]  ;;  %v2163_v39 = vpack.c.bf16 %v854_v62, %v853_v24  ;;  %v837_v34 = vld [vmem:[%s3552_s8 + $0x160] sm:$0xff] }
 0x188   :  { %v685_v6 = vadd.f32 %v681_v16, %v643_v3  ;;  %v686_v42 = vadd.f32 %v682_v58, %v644_v28  ;;  %v654_v23 = vpop.permute.xlu1 %653  ;;  %v851_v3 = vld [vmem:[%s3552_s8 + $0x1d0] sm:$0xff]  ;;  %v2129_v20 = vpack.c.bf16 %v804_v53, %v803_v17  ;;  %v2161_v28 = vpack.c.bf16 %v836_v51, %v835_v50  ;;  %v821_v16 = vld [vmem:[%s3552_s8 + $0xe0] sm:$0xff]  ;;  %v822_v58 = vld [vmem:[%s3552_s8 + $0xe8] sm:$0xff] }
 0x189   :  { %v656_v30 = vsel %vm655_vm9, %v652_v4, %v654_v23  ;;  %v659_v13 = vsel %vm655_vm9, %v654_v23, %v2844_v7  ;;  %2154 = vmatpush3.bf16.msra.mxu1 %v2153_v37  ;;  %v850_v7 = vld [vmem:[%s3552_s8 + $0x1c8] sm:$0xff]  ;;  %2124 = vmatprep.subr.bf16.mxu0 %v2123_v46  ;;  %v2131_v27 = vpack.c.bf16 %v822_v58, %v821_v16  ;;  %v823_v23 = vld [vmem:[%s3552_s8 + $0xf0] sm:$0xff]  ;;  %v824_v37 = vld [vmem:[%s3552_s8 + $0xf8] sm:$0xff] }
 0x18a   :  { %v727_v1 = vadd.f32 %v723_v43, %v685_v6  ;;  %v728_v40 = vadd.f32 %v724_v29, %v686_v42  ;;  %v683_v15 = vmul.f32 %v672_v32, %v656_v30  ;;  %v684_v4 = vmul.f32 %v676_v41, %v659_v13  ;;  %v833_v32 = vld [vmem:[%s3552_s8 + $0x140] sm:$0xff]  ;;  %v834_v41 = vld [vmem:[%s3552_s8 + $0x148] sm:$0xff]  ;;  %2126 = vmatpush3.bf16.msra.mxu0 %v2125_v55  ;;  %v856_v13 = vld [vmem:[%s3552_s8 + $0x1f8] sm:$0xff] }
 0x18b   :  { %v2155_v48 = vpack.c.bf16 %v850_v7, %v849_v38  ;;  %v2157_v8 = vpack.c.bf16 %v834_v41, %v833_v32  ;;  %2128 = vmatprep.subr.bf16.mxu0 %v2127_v49  ;;  %v838_v63 = vld [vmem:[%s3552_s8 + $0x168] sm:$0xff]  ;;  %v807_v45 = vld [vmem:[%s3552_s8 + $0x70] sm:$0xff]  ;;  %v808_v33 = vld [vmem:[%s3552_s8 + $0x78] sm:$0xff]  ;;  %v2135_v38 = vpack.c.bf16 %v824_v37, %v823_v23 }
 0x18c   :  { %v2972_v59 = vadd.f32 %v2610_v25, %v727_v1  ;;  %v2975_v14 = vadd.f32 %v2610_v25, %v728_v40  ;;  %v687_v60 = vadd.f32 %v683_v15, %v645_v31  ;;  %v688_v43 = vadd.f32 %v684_v4, %v646_v36  ;;  %v696_v57 = vpop.permute.xlu1 %695  ;;  %v805_v31 = vld [vmem:[%s3552_s8 + $0x60] sm:$0xff]  ;;  %v855_v36 = vld [vmem:[%s3552_s8 + $0x1f0] sm:$0xff]  ;;  %v840_v4 = vld [vmem:[%s3552_s8 + $0x178] sm:$0xff] }
 0x18d   :  { %v698_v61 = vsel %vm697_vm8, %v694_v9, %v696_v57  ;;  %v701_v47 = vsel %vm697_vm8, %v696_v57, %v2612_v26  ;;  %2156 = vmatprep.subr.bf16.mxu1 %v2155_v48  ;;  %v2165_v42 = vpack.c.bf16 %v838_v63, %v837_v34  ;;  %v2167_v1 = vpack.c.bf16 %v856_v13, %v855_v36  ;;  %v839_v15 = vld [vmem:[%s3552_s8 + $0x170] sm:$0xff]  ;;  %v3128_v23 = vld [vmem:[%s3547_s3 + $0x40] sm:$0xff]  ;;  %v3141_v37 = vld [vmem:[%s3547_s3 + $0x8] sm:$0xff] }
 0x18e   :  { %v741_v9 = vmax.f32 %v2972_v59, 0.0  ;;  %v742_v10 = vmax.f32 %v2975_v14, 0.0  ;;  %v725_v26 = vmul.f32 %v714_v12, %v698_v61  ;;  %v726_v35 = vmul.f32 %v718_v18, %v701_v47  ;;  %2158 = vmatpush3.bf16.msra.mxu1 %v2157_v8  ;;  %2130 = vmatpush3.bf16.msra.mxu0 %v2129_v20  ;;  %v3153_v36 = vld [vmem:[%s3547_s3 + $0x10] sm:$0xff]  ;;  %v3171_v13 = vld [vmem:[%s3547_s3 + $0x20] sm:$0xff] }
 0x18f   :  { %v2159_v12 = vpack.c.bf16 %v852_v44, %v851_v3  ;;  %2132 = vmatprep.subr.bf16.mxu0 %v2131_v27  ;;  %v2137_v40 = vpack.c.bf16 %v808_v33, %v807_v45  ;;  %v2169_v7 = vpack.c.bf16 %v840_v4, %v839_v15  ;;  %v3180_v45 = vld [vmem:[%s3547_s3 + $0x28] sm:$0xff]  ;;  %v3189_v33 = vld [vmem:[%s3547_s3 + $0x30] sm:$0xff] }
 0x190   :  { %v729_v18 = vadd.f32 %v725_v26, %v687_v60  ;;  %v730_v11 = vadd.f32 %v726_v35, %v688_v43  ;;  %v2272_v0 = vpack.i.bf16 %v742_v10, %v741_v9 }
 0x191   :  { %2160 = vmatprep.subr.bf16.mxu1 %v2159_v12 }
 0x192   :  { %v3028_v2 = vadd.f32 %v2610_v25, %v729_v18  ;;  %v3031_v56 = vadd.f32 %v2610_v25, %v730_v11  ;;  %2273 = vrot.lane.b32.xlu0 %v2272_v0, %s2340_s22  ;;  %2162 = vmatpush3.bf16.msra.mxu1 %v2161_v28  ;;  %v2133_v25 = vpack.c.bf16 %v806_v22, %v805_v31 }
 0x193   :  { %2164 = vmatprep.subr.bf16.mxu1 %v2163_v39 }
 0x194   :  { %v743_v29 = vmax.f32 %v3028_v2, 0.0  ;;  %v744_v6 = vmax.f32 %v3031_v56, 0.0  ;;  %2134 = vmatpush3.bf16.msra.mxu0 %v2133_v25 }
 0x195   :  { %2136 = vmatprep.subr.bf16.mxu0 %v2135_v38  ;;  %v3198_v38 = vld [vmem:[%s3547_s3 + $0x38] sm:$0xff] }
 0x196   :  { %2278 = vrot.lane.b32.xlu0 %v2272_v0, %s2342_s2  ;;  %v2287_v30 = vpack.i.bf16 %v744_v6, %v743_v29  ;;  %2166 = vmatpush3.bf16.msra.mxu1 %v2165_v42  ;;  %v3123_v42 = vld [vmem:[%s3547_s3] sm:$0xff] }
 0x197   :  { %2168 = vmatprep.subr.bf16.mxu1 %v2167_v1 }
 0x198   :  { %2288 = vrot.lane.b32.xlu1 %v2287_v30, %s2340_s22  ;;  %2138 = vmatpush3.bf16.msra.mxu0 %v2137_v40 }
 0x199   :  { %1944 = vmatprep.subr.mxu0 %v3564_v5 }
 0x19a   :  { %2283 = vrot.lane.b32.xlu0 %v2272_v0, %s2335_s19  ;;  %2170 = vmatpush3.bf16.msra.mxu1 %v2169_v7 }
 0x19b   :  { %2245 = vmatprep.subr.mxu1 %v3564_v5 }
 0x19c   :  { %2293 = vrot.lane.b32.xlu1 %v2287_v30, %s2342_s2 }
 0x1a0   :  { %2298 = vrot.lane.b32.xlu1 %v2287_v30, %s2335_s19  ;;  %v3162_v30 = vld [vmem:[%s3547_s3 + $0x18] sm:$0xff]  ;;  %s2344_s19 = smov 9   ;;  %s2346_s3 = smov 7  }
 0x204   :  { %v2274_v54 = vpop.permute.xlu0 %2273 }
 0x205   :  { %v2276_v60 = vunpack.i.h.bf16 %v2274_v54  ;;  %v2275_v57 = vunpack.i.l.bf16 %v2274_v54 }
 0x207   :  { %v755_v17 = vsel %vm571_vm6, %v2275_v57, %v2276_v60 }
 0x208   :  { %v2279_v46 = vpop.permute.xlu0 %2278  ;;  %v757_v14 = vmax.f32 %v741_v9, %v755_v17 }
 0x209   :  { %v2281_v61 = vunpack.i.h.bf16 %v2279_v46  ;;  %v2280_v47 = vunpack.i.l.bf16 %v2279_v46 }
 0x20a   :  { %v2289_v48 = vpop.permute.xlu1 %2288 }
 0x20b   :  { %v2291_v55 = vunpack.i.h.bf16 %v2289_v48  ;;  %v2290_v32 = vunpack.i.l.bf16 %v2289_v48  ;;  %v771_v53 = vsel %vm655_vm9, %v2280_v47, %v2281_v61 }
 0x20c   :  { %v2284_v41 = vpop.permute.xlu0 %2283 }
 0x20d   :  { %v2286_v43 = vunpack.i.h.bf16 %v2284_v41  ;;  %v2285_v8 = vunpack.i.l.bf16 %v2284_v41  ;;  %v753_v21 = vsel %vm571_vm6, %v2290_v32, %v2291_v55  ;;  %v754_v35 = vsel %vm571_vm6, %v2276_v60, %v2290_v32 }
 0x20e   :  { %v2294_v19 = vpop.permute.xlu1 %2293  ;;  %v756_v12 = vsel %vm571_vm6, %v2291_v55, %v2275_v57  ;;  %v759_v20 = vmax.f32 %v743_v29, %v753_v21  ;;  %v758_v28 = vmax.f32 %v742_v10, %v754_v35  ;;  %v3220_v35 = vld [vmem:[%s3551_s7] ss:$0 sm:$0xff] }
 0x20f   :  { %v2296_v3 = vunpack.i.h.bf16 %v2294_v19  ;;  %v2295_v26 = vunpack.i.l.bf16 %v2294_v19  ;;  %v783_v44 = vsel %vm697_vm8, %v2285_v8, %v2286_v43  ;;  %v760_v31 = vmax.f32 %v744_v6, %v756_v12 }
 0x210   :  { %v785_v18 = vmax.f32 %v771_v53, %v783_v44  ;;  %v3225_v44 = vld [vmem:[%s3551_s7 + $0x2] ss:$0 sm:$0xff] }
 0x211   :  { %v769_v11 = vsel %vm655_vm9, %v2295_v26, %v2296_v3  ;;  %v770_v0 = vsel %vm655_vm9, %v2281_v61, %v2295_v26  ;;  %v772_v16 = vsel %vm655_vm9, %v2296_v3, %v2280_v47  ;;  %v3215_v3 = vld [vmem:[%s3551_s7 + $0x1] ss:$0 sm:$0xff] }
 0x212   :  { %v2299_v49 = vpop.permute.xlu1 %2298  ;;  %v789_v34 = vmax.f32 %v757_v14, %v785_v18  ;;  %v3257_v14 = vld [vmem:[%s3551_s7 + $0x7] ss:$0 sm:$0xff] }
 0x213   :  { %v2301_v50 = vunpack.i.h.bf16 %v2299_v49  ;;  %v2300_v51 = vunpack.i.l.bf16 %v2299_v49  ;;  %v3231_v49 = vld [vmem:[%s3551_s7 + $0x3] ss:$0 sm:$0xff] }
 0x215   :  { %v781_v58 = vsel %vm697_vm8, %v2300_v51, %v2301_v50  ;;  %v782_v24 = vsel %vm697_vm8, %v2286_v43, %v2300_v51  ;;  %v784_v2 = vsel %vm697_vm8, %v2301_v50, %v2285_v8 }
 0x216   :  { %v787_v27 = vmax.f32 %v769_v11, %v781_v58  ;;  %v786_v62 = vmax.f32 %v770_v0, %v782_v24  ;;  %v788_v22 = vmax.f32 %v772_v16, %v784_v2  ;;  %v3239_v0 = vld [vmem:[%s3551_s7 + $0x4] ss:$0 sm:$0xff]  ;;  %v3249_v24 = vld [vmem:[%s3551_s7 + $0x6] ss:$0 sm:$0xff] }
 0x218   :  { %v791_v10 = vmax.f32 %v759_v20, %v787_v27  ;;  %v790_v39 = vmax.f32 %v758_v28, %v786_v62  ;;  %v792_v25 = vmax.f32 %v760_v31, %v788_v22  ;;  %v3244_v28 = vld [vmem:[%s3551_s7 + $0x5] ss:$0 sm:$0xff] }
 0x21a   :  { %921 = vmatprep.mubr.f32.mxu0 %v790_v39  ;;  %991 = vmatprep.mubr.f32.mxu1 %v792_v25 }
 0x21b   :  { %922 = vmatmul.mubr.f32.vlgmr.msra.gmra.mrb[16].mxu0 %v789_v34  ;;  %992 = vmatmul.mubr.f32.vlgmr.msra.gmra.mrb[20].mxu1 %v791_v10  ;;  %v3262_v10 = vld [vmem:[%s3551_s7 + $0x8] ss:$0 sm:$0xff] }
 0x21c   :  { %1946 = vmatprep.mubr.msk.f32.mxu0 %vm2343_vm10, %v3564_v5  ;;  %1970 = vmatprep.mubr.msk.f32.mxu1 %vm2343_vm10, %v3564_v5 }
 0x2ee   :  { %v1835_v52 = vpop.f32.mrb[16].mxu0  ;;  %v1870_v56 = vpop.f32.mrb[20].mxu1 }
 0x2ef   :  { %v1836_v63 = vpop.f32.mrb[17].mxu0  ;;  %v1871_v59 = vpop.f32.mrb[21].mxu1 }
 0x2f0   :  { %v1837_v9 = vadd.f32 %v1836_v63, %v1835_v52  ;;  %v1872_v29 = vadd.f32 %v1871_v59, %v1870_v56 }
 0x2f2   :  { %v3118_v6 = vadd.f32 %v1872_v29, %v1837_v9  ;;  %v1006_v29 = vld [vmem:[%s3548_s4] sm:$0xff] }
 0x2f4   :  { %1945 = vmatpush3.msra.mxu0 %v3118_v6  ;;  %2246 = vmatpush3.msra.mxu1 %v3118_v6 }
 0x2f5   :  { %1947 = vmatmul.mubr.msk.f32.vlgmr.msra.gmra.mrb[18].mxu0 %vm1008_vm11, %v3123_v42  ;;  %1971 = vmatmul.mubr.msk.f32.vlgmr.msra.gmra.mrb[22].mxu1 %vm1008_vm11, %v3128_v23 }
 0x2f6   :  { %1949 = vmatprep.mubr.msk.f32.mxu0 %vm2343_vm10, %v3564_v5  ;;  %1973 = vmatprep.subr.mxu1 %v3564_v5 }
 0x2f7   :  { %1975 = vmatprep.mubr.msk.f32.mxu1 %vm2343_vm10, %v3564_v5 }
 0x2f9   :  { %1950 = vmatmul.mubr.msk.f32.gmra.mrb[20].mxu0 %vm1008_vm11, %v3141_v37 }
 0x2fa   :  { %1952 = vmatprep.mubr.msk.f32.mxu0 %vm2343_vm10, %v3564_v5 }
 0x2fd   :  { %1953 = vmatmul.mubr.msk.f32.gmra.mrb[22].mxu0 %vm1008_vm11, %v3153_v36 }
 0x2fe   :  { %1955 = vmatprep.mubr.msk.f32.mxu0 %vm2343_vm10, %v3564_v5 }
 0x301   :  { %1956 = vmatmul.mubr.msk.f32.gmra.mrb[24].mxu0 %vm1008_vm11, %v3162_v30 }
 0x302   :  { %1958 = vmatprep.mubr.msk.f32.mxu0 %vm2343_vm10, %v3564_v5 }
 0x305   :  { %1959 = vmatmul.mubr.msk.f32.gmra.mrb[26].mxu0 %vm1008_vm11, %v3171_v13 }
 0x306   :  { %1961 = vmatprep.mubr.msk.f32.mxu0 %vm2343_vm10, %v3564_v5 }
 0x309   :  { %1962 = vmatmul.mubr.msk.f32.gmra.mrb[28].mxu0 %vm1008_vm11, %v3180_v45 }
 0x30a   :  { %1964 = vmatprep.mubr.msk.f32.mxu0 %vm2343_vm10, %v3564_v5 }
 0x30d   :  { %1965 = vmatmul.mubr.msk.f32.gmra.mrb[30].mxu0 %vm1008_vm11, %v3189_v33 }
 0x30e   :  { %1967 = vmatprep.mubr.msk.f32.mxu0 %vm2343_vm10, %v3564_v5 }
 0x311   :  { %1968 = vmatmul.mubr.msk.f32.gmra.mrb[32].mxu0 %vm1008_vm11, %v3198_v38 }
 0x312   :  { %2034 = vmatprep.mubr.msk.f32.mxu0 %vm2343_vm10, %v3564_v5 }
 0x3c8   :  { %v1102_v1 = vpop.f32.mrb[18].mxu0  ;;  %v1142_v40 = vpop.f32.mrb[22].mxu1 }
 0x3c9   :  { %1146 = vrot.lane.b32.xlu0 %v1102_v1, %s2344_s19  ;;  %v1948_v15 = vpop.f32.mrb[19].mxu0  ;;  %v1972_v4 = vpop.f32.mrb[23].mxu1 }
 0x3cc   :  { %v1107_v7 = vpop.f32.mrb[20].mxu0 }
 0x3cd   :  { %1154 = vrot.lane.b32.xlu1 %v1107_v7, %s2345_s24  ;;  %v1951_v54 = vpop.f32.mrb[21].mxu0  ;;  %v1007_v7 = vld [vmem:[%s3549_s5] sm:$0xff] }
 0x3d0   :  { %v1112_v46 = vpop.f32.mrb[22].mxu0 }
 0x3d1   :  { %1162 = vrot.lane.b32.xlu0 %v1112_v46, %s2346_s3  ;;  %v1954_v48 = vpop.f32.mrb[23].mxu0 }
 0x3d4   :  { %v1117_v55 = vpop.f32.mrb[24].mxu0 }
 0x3d5   :  { %1170 = vrot.lane.b32.xlu1 %v1117_v55, %s2339_s21  ;;  %v1957_v32 = vpop.f32.mrb[25].mxu0 }
 0x3d8   :  { %v1122_v41 = vpop.f32.mrb[26].mxu0 }
 0x3d9   :  { %v1960_v60 = vpop.f32.mrb[27].mxu0  ;;  %v1182_v2 = vmul.f32 %v3239_v0, %v1122_v41 }
 0x3dc   :  { %v1127_v43 = vpop.f32.mrb[28].mxu0 }
 0x3dd   :  { %1184 = vrot.lane.b32.xlu0 %v1127_v43, %s2340_s22  ;;  %v1963_v57 = vpop.f32.mrb[29].mxu0 }
 0x3e0   :  { %v1132_v61 = vpop.f32.mrb[30].mxu0 }
 0x3e1   :  { %1192 = vrot.lane.b32.xlu1 %v1132_v61, %s2347_s25  ;;  %v1966_v47 = vpop.f32.mrb[31].mxu0 }
 0x3e4   :  { %v1137_v8 = vpop.f32.mrb[32].mxu0 }
 0x3e5   :  { %1200 = vrot.lane.b32.xlu0 %v1137_v8, %s2348_s26  ;;  %v1969_v19 = vpop.f32.mrb[33].mxu0  ;;  %1208 = vrot.lane.b32.xlu1 %v1142_v40, %s2349_s27 }
 0x43b   :  { %v1147_v21 = vpop.permute.xlu0 %1146 }
 0x43c   :  { %v1152_v20 = vmul.f32 %v3220_v35, %v1147_v21 }
 0x43f   :  { %v1155_v26 = vpop.permute.xlu1 %1154 }
 0x440   :  { %v1160_v53 = vmul.f32 %v3215_v3, %v1155_v26 }
 0x442   :  { %v1161_v51 = vadd.f32 %v1160_v53, %v1152_v20 }
 0x443   :  { %v1163_v17 = vpop.permute.xlu0 %1162 }
 0x444   :  { %v1168_v50 = vmul.f32 %v3225_v44, %v1163_v17 }
 0x446   :  { %v1169_v11 = vadd.f32 %v1168_v50, %v1161_v51 }
 0x447   :  { %v1171_v12 = vpop.permute.xlu1 %1170 }
 0x448   :  { %v1176_v18 = vmul.f32 %v3231_v49, %v1171_v12 }
 0x44a   :  { %v1177_v58 = vadd.f32 %v1176_v18, %v1169_v11 }
 0x44c   :  { %v1183_v31 = vadd.f32 %v1182_v2, %v1177_v58 }
 0x44f   :  { %v1185_v16 = vpop.permute.xlu0 %1184 }
 0x450   :  { %v1190_v27 = vmul.f32 %v3244_v28, %v1185_v16 }
 0x452   :  { %v1191_v39 = vadd.f32 %v1190_v27, %v1183_v31 }
 0x453   :  { %v1193_v62 = vpop.permute.xlu1 %1192 }
 0x454   :  { %v1198_v22 = vmul.f32 %v3249_v24, %v1193_v62 }
 0x456   :  { %v1199_v52 = vadd.f32 %v1198_v22, %v1191_v39 }
 0x457   :  { %v1201_v25 = vpop.permute.xlu0 %1200  ;;  %v1209_v34 = vpop.permute.xlu1 %1208 }
 0x458   :  { %v1206_v56 = vmul.f32 %v3257_v14, %v1201_v25  ;;  %v1214_v63 = vmul.f32 %v3262_v10, %v1209_v34 }
 0x45a   :  { %v1207_v59 = vadd.f32 %v1206_v56, %v1199_v52 }
 0x45c   :  { %v1215_v9 = vadd.f32 %v1214_v63, %v1207_v59 }
 0x45e   :  { %1216 = vadd.xlane.f32.xlu0 %v1215_v9 }
 0x474   :  { %1229 = vperm.xlu0 %2271, %v1006_v29  }
 0x4eb   :  { %v1217_v1 = vpop.xlane.xlu0 %1216 }
 0x4ec   :  { %v1218_v40 = vmul.f32 0.0078125, %v1217_v1 }
 0x4ee   :  { %v1219_v15 = vsub.f32 %v1215_v9, %v1218_v40 }
 0x4f0   :  { %v1220_v4 = vmul.f32 %v1219_v15, %v1219_v15 }
 0x4f2   :  { %1221 = vadd.xlane.f32.xlu1 %v1220_v4 }
 0x4f3   :  { %v3272_v41 = vpop.permute.xlu0 %1229 }
 0x503   :  { %1235 = vperm.xlu1 %2302, %v1007_v7  }
 0x57f   :  { %v1222_v54 = vpop.xlane.xlu1 %1221 }
 0x580   :  { %v1223_v46 = vmul.f32 0.0078125, %v1222_v54  ;;  %v1412_v54 = vld [vmem:[%s3553_s9 + $0x18] sm:$0xff] }
 0x582   :  { %v1224_v48 = vadd.f32 1e-05, %v1223_v46 }
 0x583   :  { %v3274_v60 = vpop.permute.xlu1 %1235 }
 0x584   :  { %2305 = vrsqrt.f32 %v1224_v48  ;;  %v1413_v48 = vld [vmem:[%s3553_s9 + $0x20] sm:$0xff] }
 0x58e   :  { %v2306_v55 = vpop.eup %2305 }
 0x58f   :  { %v1226_v32 = vmul.f32 %v2306_v55, %v1219_v15  ;;  %v1414_v55 = vld [vmem:[%s3553_s9 + $0x28] sm:$0xff] }
 0x591   :  { %v1232_v43 = vmul.f32 %v3272_v41, %v1226_v32  ;;  %v2178_v32 = vpack.c.bf16 %v1414_v55, %v1413_v48  ;;  %v1639_v48 = vld [vmem:[%s3556_s12 + $0x18] sm:$0xff] }
 0x593   :  { %v1238_v57 = vadd.f32 %v3274_v60, %v1232_v43  ;;  %v1415_v43 = vld [vmem:[%s3553_s9 + $0x30] sm:$0xff] }
 0x595   :  { %v1239_v61 = vmax.f32 %v1238_v57, 0.0  ;;  %v1416_v57 = vld [vmem:[%s3553_s9 + $0x38] sm:$0xff] }
 0x597   :  { %v3279_v47 = vadd.f32 %v1239_v61, %v3118_v6  ;;  %v2181_v61 = vpack.c.bf16 %v1416_v57, %v1415_v43  ;;  %v1641_v43 = vld [vmem:[%s3556_s12 + $0x28] sm:$0xff] }
 0x599   :  { %1974 = vmatpush3.msra.mxu1 %v3279_v47 }
 0x59a   :  { %1976 = vmatmul.mubr.msk.f32.vlgmr.msra.gmra.mrb[24].mxu1 %vm1008_vm11, %v3123_v42 }
 0x59b   :  { %1978 = vmatprep.mubr.msk.f32.mxu1 %vm2343_vm10, %v3564_v5 }
 0x59e   :  { %1979 = vmatmul.mubr.msk.f32.gmra.mrb[26].mxu1 %vm1008_vm11, %v3141_v37 }
 0x59f   :  { %1981 = vmatprep.mubr.msk.f32.mxu1 %vm2343_vm10, %v3564_v5 }
 0x5a2   :  { %1982 = vmatmul.mubr.msk.f32.gmra.mrb[28].mxu1 %vm1008_vm11, %v3153_v36 }
 0x5a3   :  { %1984 = vmatprep.mubr.msk.f32.mxu1 %vm2343_vm10, %v3564_v5 }
 0x5a6   :  { %1985 = vmatmul.mubr.msk.f32.gmra.mrb[30].mxu1 %vm1008_vm11, %v3162_v30 }
 0x5a7   :  { %1987 = vmatprep.mubr.msk.f32.mxu1 %vm2343_vm10, %v3564_v5 }
 0x5aa   :  { %1988 = vmatmul.mubr.msk.f32.gmra.mrb[32].mxu1 %vm1008_vm11, %v3171_v13 }
 0x5ab   :  { %1990 = vmatprep.mubr.msk.f32.mxu1 %vm2343_vm10, %v3564_v5 }
 0x5ae   :  { %1991 = vmatmul.mubr.msk.f32.gmra.mrb[34].mxu1 %vm1008_vm11, %v3180_v45 }
 0x5af   :  { %1993 = vmatprep.mubr.msk.f32.mxu1 %vm2343_vm10, %v3564_v5 }
 0x5b2   :  { %1994 = vmatmul.mubr.msk.f32.gmra.mrb[36].mxu1 %vm1008_vm11, %v3189_v33 }
 0x5b3   :  { %1996 = vmatprep.mubr.msk.f32.mxu1 %vm2343_vm10, %v3564_v5 }
 0x5b6   :  { %1997 = vmatmul.mubr.msk.f32.gmra.mrb[38].mxu1 %vm1008_vm11, %v3198_v38 }
 0x5b7   :  { %1999 = vmatprep.mubr.msk.f32.mxu1 %vm2343_vm10, %v3564_v5 }
 0x5ba   :  { %2000 = vmatmul.mubr.msk.f32.gmra.mrb[40].mxu1 %vm1008_vm11, %v3128_v23 }
 0x5bb   :  { %2069 = vmatprep.mubr.msk.f32.mxu1 %vm2343_vm10, %v3564_v5 }
 0x66d   :  { %v1307_v6 = vpop.f32.mrb[24].mxu1 }
 0x66e   :  { %v1977_v42 = vpop.f32.mrb[25].mxu1  ;;  %1351 = vrot.lane.b32.xlu0 %v1307_v6, %s2344_s19  ;;  %v1417_v6 = vld [vmem:[%s3553_s9 + $0x40] sm:$0xff] }
 0x66f   :  { %v1418_v42 = vld [vmem:[%s3553_s9 + $0x48] sm:$0xff] }
 0x671   :  { %v1312_v37 = vpop.f32.mrb[26].mxu1 }
 0x672   :  { %1355 = vrot.lane.b32.xlu1 %v1312_v37, %s2345_s24  ;;  %v1980_v36 = vpop.f32.mrb[27].mxu1  ;;  %v2184_v37 = vpack.c.bf16 %v1418_v42, %v1417_v6  ;;  %v1643_v6 = vld [vmem:[%s3556_s12 + $0x38] sm:$0xff] }
 0x673   :  { %v1419_v36 = vld [vmem:[%s3553_s9 + $0x50] sm:$0xff] }
 0x675   :  { %v1317_v30 = vpop.f32.mrb[28].mxu1 }
 0x676   :  { %1359 = vrot.lane.b32.xlu0 %v1317_v30, %s2346_s3  ;;  %v1983_v13 = vpop.f32.mrb[29].mxu1  ;;  %v1420_v30 = vld [vmem:[%s3553_s9 + $0x58] sm:$0xff]  ;;  %s2355_s3 = smov 96  }
 0x677   :  { %v2187_v13 = vpack.c.bf16 %v1420_v30, %v1419_v36  ;;  %v1645_v36 = vld [vmem:[%s3556_s12 + $0x48] sm:$0xff] }
 0x679   :  { %v1322_v45 = vpop.f32.mrb[30].mxu1 }
 0x67a   :  { %1363 = vrot.lane.b32.xlu1 %v1322_v45, %s2339_s21  ;;  %v1986_v33 = vpop.f32.mrb[31].mxu1 }
 0x67d   :  { %v1327_v23 = vpop.f32.mrb[32].mxu1 }
 0x67e   :  { %v1989_v38 = vpop.f32.mrb[33].mxu1  ;;  %v1367_v34 = vmul.f32 %v3239_v0, %v1327_v23 }
 0x67f   :  { %v1421_v38 = vld [vmem:[%s3553_s9 + $0x60] sm:$0xff] }
 0x681   :  { %v1332_v8 = vpop.f32.mrb[34].mxu1 }
 0x682   :  { %1369 = vrot.lane.b32.xlu0 %v1332_v8, %s2340_s22  ;;  %v1992_v19 = vpop.f32.mrb[35].mxu1  ;;  %v1422_v8 = vld [vmem:[%s3553_s9 + $0x68] sm:$0xff] }
 0x683   :  { %v2190_v19 = vpack.c.bf16 %v1422_v8, %v1421_v38  ;;  %v1649_v38 = vld [vmem:[%s3556_s12 + $0x68] sm:$0xff] }
 0x685   :  { %v1337_v21 = vpop.f32.mrb[36].mxu1 }
 0x686   :  { %1373 = vrot.lane.b32.xlu1 %v1337_v21, %s2347_s25  ;;  %v1995_v26 = vpop.f32.mrb[37].mxu1 }
 0x689   :  { %v1342_v17 = vpop.f32.mrb[38].mxu1 }
 0x68a   :  { %1377 = vrot.lane.b32.xlu0 %v1342_v17, %s2348_s26  ;;  %v1998_v53 = vpop.f32.mrb[39].mxu1  ;;  %v1423_v17 = vld [vmem:[%s3553_s9 + $0x70] sm:$0xff] }
 0x68b   :  { %v1424_v53 = vld [vmem:[%s3553_s9 + $0x78] sm:$0xff] }
 0x68d   :  { %v1347_v12 = vpop.f32.mrb[40].mxu1 }
 0x68e   :  { %1381 = vrot.lane.b32.xlu1 %v1347_v12, %s2349_s27  ;;  %v2001_v20 = vpop.f32.mrb[41].mxu1  ;;  %v2193_v12 = vpack.c.bf16 %v1424_v53, %v1423_v17 }
 0x6e0   :  { %v1352_v50 = vpop.permute.xlu0 %1351 }
 0x6e1   :  { %v1353_v58 = vmul.f32 %v3220_v35, %v1352_v50 }
 0x6e4   :  { %v1356_v51 = vpop.permute.xlu1 %1355 }
 0x6e5   :  { %v1357_v11 = vmul.f32 %v3215_v3, %v1356_v51 }
 0x6e7   :  { %v1358_v27 = vadd.f32 %v1357_v11, %v1353_v58 }
 0x6e8   :  { %v1360_v18 = vpop.permute.xlu0 %1359 }
 0x6e9   :  { %v1361_v2 = vmul.f32 %v3225_v44, %v1360_v18 }
 0x6eb   :  { %v1362_v31 = vadd.f32 %v1361_v2, %v1358_v27 }
 0x6ec   :  { %v1364_v16 = vpop.permute.xlu1 %1363 }
 0x6ed   :  { %v1365_v62 = vmul.f32 %v3231_v49, %v1364_v16 }
 0x6ef   :  { %v1366_v39 = vadd.f32 %v1365_v62, %v1362_v31  ;;  %v1544_v62 = vld [vmem:[%s3554_s10 + $0x10] sm:$0xff] }
 0x6f1   :  { %v1368_v56 = vadd.f32 %v1367_v34, %v1366_v39 }
 0x6f4   :  { %v1370_v22 = vpop.permute.xlu0 %1369 }
 0x6f5   :  { %v1371_v52 = vmul.f32 %v3244_v28, %v1370_v22  ;;  %v1409_v28 = vld [vmem:[%s3553_s9] sm:$0xff]  ;;  %v1545_v22 = vld [vmem:[%s3554_s10 + $0x18] sm:$0xff] }
 0x6f6   :  { %v2199_v39 = vpack.c.bf16 %v1545_v22, %v1544_v62 }
 0x6f7   :  { %v1372_v59 = vadd.f32 %v1371_v52, %v1368_v56  ;;  %v1548_v52 = vld [vmem:[%s3554_s10 + $0x30] sm:$0xff]  ;;  %v1549_v56 = vld [vmem:[%s3554_s10 + $0x38] sm:$0xff] }
 0x6f8   :  { %v1374_v25 = vpop.permute.xlu1 %1373 }
 0x6f9   :  { %v1375_v63 = vmul.f32 %v3249_v24, %v1374_v25  ;;  %v1410_v24 = vld [vmem:[%s3553_s9 + $0x8] sm:$0xff] }
 0x6fa   :  { %v2172_v7 = vpack.c.bf16 %v1410_v24, %v1409_v28  ;;  %v1547_v25 = vld [vmem:[%s3554_s10 + $0x28] sm:$0xff]  ;;  %v1557_v28 = vld [vmem:[%s3554_s10 + $0x78] sm:$0xff] }
 0x6fb   :  { %v1376_v9 = vadd.f32 %v1375_v63, %v1372_v59  ;;  %v2205_v63 = vpack.c.bf16 %v1549_v56, %v1548_v52  ;;  %v1551_v59 = vld [vmem:[%s3554_s10 + $0x48] sm:$0xff] }
 0x6fc   :  { %v1378_v3 = vpop.permute.xlu0 %1377 }
 0x6fd   :  { %v1379_v35 = vmul.f32 %v3257_v14, %v1378_v3  ;;  %v1411_v14 = vld [vmem:[%s3553_s9 + $0x10] sm:$0xff]  ;;  %v1550_v3 = vld [vmem:[%s3554_s10 + $0x40] sm:$0xff] }
 0x6fe   :  { %v2175_v46 = vpack.c.bf16 %v1412_v54, %v1411_v14  ;;  %v1636_v14 = vld [vmem:[%s3556_s12] sm:$0xff] }
 0x6ff   :  { %v1380_v29 = vadd.f32 %v1379_v35, %v1376_v9  ;;  %v2208_v35 = vpack.c.bf16 %v1551_v59, %v1550_v3  ;;  %v1552_v9 = vld [vmem:[%s3554_s10 + $0x50] sm:$0xff] }
 0x700   :  { %v1382_v44 = vpop.permute.xlu1 %1381 }
 0x701   :  { %v1383_v49 = vmul.f32 %v3262_v10, %v1382_v44  ;;  %v2350_v10 = vmov 0.0|0.0   ;;  %v1553_v44 = vld [vmem:[%s3554_s10 + $0x58] sm:$0xff] }
 0x702   :  { %2171 = vmatprep.subr.bf16.mxu0 %v2350_v10  ;;  %2195 = vmatprep.subr.bf16.mxu1 %v2350_v10 }
 0x703   :  { %v1384_v1 = vadd.f32 %v1383_v49, %v1380_v29  ;;  %2173 = vmatpush3.bf16.msra.mxu0 %v2172_v7  ;;  %v2211_v29 = vpack.c.bf16 %v1553_v44, %v1552_v9  ;;  %v1637_v7 = vld [vmem:[%s3556_s12 + $0x8] sm:$0xff] }
 0x704   :  { %2174 = vmatprep.subr.bf16.mxu0 %v2350_v10  ;;  %v2220_v54 = vpack.c.bf16 %v1637_v7, %v1636_v14 }
 0x705   :  { %1385 = vadd.xlane.f32.xlu0 %v1384_v1 }
 0x707   :  { %2176 = vmatpush3.bf16.msra.mxu0 %v2175_v46  ;;  %v1638_v46 = vld [vmem:[%s3556_s12 + $0x10] sm:$0xff] }
 0x708   :  { %2177 = vmatprep.subr.bf16.mxu0 %v2350_v10  ;;  %v2223_v55 = vpack.c.bf16 %v1639_v48, %v1638_v46 }
 0x70b   :  { %2179 = vmatpush3.bf16.msra.mxu0 %v2178_v32  ;;  %v1640_v32 = vld [vmem:[%s3556_s12 + $0x20] sm:$0xff] }
 0x70c   :  { %2180 = vmatprep.subr.bf16.mxu0 %v2350_v10  ;;  %v2226_v57 = vpack.c.bf16 %v1641_v43, %v1640_v32 }
 0x70f   :  { %2182 = vmatpush3.bf16.msra.mxu0 %v2181_v61  ;;  %v1642_v61 = vld [vmem:[%s3556_s12 + $0x30] sm:$0xff] }
 0x710   :  { %2183 = vmatprep.subr.bf16.mxu0 %v2350_v10  ;;  %v2229_v42 = vpack.c.bf16 %v1643_v6, %v1642_v61 }
 0x713   :  { %2185 = vmatpush3.bf16.msra.mxu0 %v2184_v37  ;;  %v1644_v37 = vld [vmem:[%s3556_s12 + $0x40] sm:$0xff] }
 0x714   :  { %2186 = vmatprep.subr.bf16.mxu0 %v2350_v10  ;;  %v2232_v30 = vpack.c.bf16 %v1645_v36, %v1644_v37 }
 0x717   :  { %2188 = vmatpush3.bf16.msra.mxu0 %v2187_v13  ;;  %v1646_v13 = vld [vmem:[%s3556_s12 + $0x50] sm:$0xff] }
 0x718   :  { %2189 = vmatprep.subr.bf16.mxu0 %v2350_v10 }
 0x71b   :  { %2191 = vmatpush3.bf16.msra.mxu0 %v2190_v19 }
 0x71c   :  { %2192 = vmatprep.subr.bf16.mxu0 %v2350_v10 }
 0x71f   :  { %2194 = vmatpush3.bf16.msra.mxu0 %v2193_v12 }
 0x720   :  { %2219 = vmatprep.subr.bf16.mxu0 %v2350_v10 }
 0x792   :  { %v1386_v40 = vpop.xlane.xlu0 %1385 }
 0x793   :  { %v1387_v15 = vmul.f32 0.0078125, %v1386_v40  ;;  %v1555_v40 = vld [vmem:[%s3554_s10 + $0x68] sm:$0xff] }
 0x795   :  { %v1388_v4 = vsub.f32 %v1384_v1, %v1387_v15  ;;  %v1554_v1 = vld [vmem:[%s3554_s10 + $0x60] sm:$0xff] }
 0x797   :  { %v1389_v0 = vmul.f32 %v1388_v4, %v1388_v4 }
 0x799   :  { %1390 = vadd.xlane.f32.xlu1 %v1389_v0  ;;  %v1556_v0 = vld [vmem:[%s3554_s10 + $0x70] sm:$0xff] }
 0x79a   :  { %v2217_v24 = vpack.c.bf16 %v1557_v28, %v1556_v0 }
 0x826   :  { %v1391_v45 = vpop.xlane.xlu1 %1390 }
 0x827   :  { %v1392_v33 = vmul.f32 0.0078125, %v1391_v45  ;;  %v1647_v45 = vld [vmem:[%s3556_s12 + $0x58] sm:$0xff] }
 0x829   :  { %v1393_v23 = vadd.f32 1e-05, %v1392_v33  ;;  %v2235_v33 = vpack.c.bf16 %v1647_v45, %v1646_v13 }
 0x82b   :  { %2307 = vrsqrt.f32 %v1393_v23  ;;  %v1648_v23 = vld [vmem:[%s3556_s12 + $0x60] sm:$0xff] }
 0x82c   :  { %v2238_v8 = vpack.c.bf16 %v1649_v38, %v1648_v23 }
 0x835   :  { %v2308_v21 = vpop.eup %2307 }
 0x836   :  { %v1395_v26 = vmul.f32 %v2308_v21, %v1388_v4  ;;  %v2214_v4 = vpack.c.bf16 %v1555_v40, %v1554_v1 }
 0x838   :  { %v1396_v20 = vmul.f32 %v1395_v26, %v3272_v41 }
 0x83a   :  { %v1397_v50 = vadd.f32 %v1396_v20, %v3274_v60  ;;  %v1542_v60 = vld [vmem:[%s3554_s10] sm:$0xff] }
 0x83c   :  { %v1398_v51 = vmax.f32 %v1397_v50, 0.0  ;;  %v1650_v50 = vld [vmem:[%s3556_s12 + $0x70] sm:$0xff] }
 0x83e   :  { %v1399_v18 = vadd.f32 %v1398_v51, %v3279_v47  ;;  %v1543_v47 = vld [vmem:[%s3554_s10 + $0x8] sm:$0xff]  ;;  %v1651_v51 = vld [vmem:[%s3556_s12 + $0x78] sm:$0xff]  ;;  %s2309_s12 = scalar_lea.vmem %s1737_s23, 32 }
 0x83f   :  { %v2196_v31 = vpack.c.bf16 %v1543_v47, %v1542_v60  ;;  %p2310_p0 = scmp.ne.s32.totalorder %s1737_s23, %s2309_s12  ;;  %p2315_p2 = scmp.lt.s32.totalorder %s2309_s12, %s2309_s12 }
 0x840   :  { %1403 = vrot.lane.b32.xlu1 %v1399_v18, %s2348_s26  ;;  %1400 = vrot.lane.b32.xlu0 %v1399_v18, %s2340_s22 }
 0x841   :  { %2197 = vmatpush3.bf16.msra.mxu1 %v2196_v31  ;;  %p2316_p3 = por %p2315_p2, %p2314_p1 }
 0x842   :  { %2198 = vmatprep.subr.bf16.mxu1 %v2350_v10 }
 0x843   :  { %p2317_p4 = pnand %p2316_p3, %p2310_p0 }
 0x844   :  { %1405 = vrot.lane.b32.xlu0 %v1399_v18, %s2349_s27 }
 0x845   :  { %2200 = vmatpush3.bf16.msra.mxu1 %v2199_v39 }
 0x846   :  { %2201 = vmatprep.subr.bf16.mxu1 %v2350_v10 }
 0x8b2   :  { %v1401_v11 = vpop.permute.xlu0 %1400  ;;  %v1404_v16 = vpop.permute.xlu1 %1403 }
 0x8b3   :  { %v1402_v2 = vmax.f32 %v1399_v18, %v1401_v11  ;;  %v2241_v18 = vpack.c.bf16 %v1651_v51, %v1650_v50  ;;  %v1801_v11 = vld [vmem:[%s3555_s11] ss:$0 sm:$0xff] }
 0x8b6   :  { %v1406_v58 = vpop.permute.xlu0 %1405 }
 0x8b7   :  { %v1407_v27 = vmax.f32 %v1404_v16, %v1406_v58 }
 0x8b9   :  { %v1408_v41 = vmax.f32 %v1402_v2, %v1407_v27 }
 0x8bb   :  { %2035 = vmatmul.mubr.f32.vlgmr.msra.gmra.mrb[34].mxu0 %v1408_v41  ;;  %v1802_v41 = vld [vmem:[%s3557_s13] ss:$0 sm:$0xff] }
 0x8bc   :  { %2104 = vmatprep.mubr.msk.f32.mxu0 %vm2343_vm10, %v3564_v5  ;;  %v1546_v5 = vld [vmem:[%s3554_s10 + $0x20] sm:$0xff]  ;;  %2221 = vmatpush3.bf16.msra.mxu0 %v2220_v54 }
 0x8bd   :  { %v2202_v34 = vpack.c.bf16 %v1547_v25, %v1546_v5  ;;  %2222 = vmatprep.subr.bf16.mxu0 %v2350_v10 }
 0x8bf   :  { %2203 = vmatpush3.bf16.msra.mxu1 %v2202_v34 }
 0x8c0   :  { %2204 = vmatprep.subr.bf16.mxu1 %v2350_v10  ;;  %2224 = vmatpush3.bf16.msra.mxu0 %v2223_v55 }
 0x8c1   :  { %2225 = vmatprep.subr.bf16.mxu0 %v2350_v10 }
 0x8c3   :  { %2206 = vmatpush3.bf16.msra.mxu1 %v2205_v63 }
 0x8c4   :  { %2207 = vmatprep.subr.bf16.mxu1 %v2350_v10  ;;  %2227 = vmatpush3.bf16.msra.mxu0 %v2226_v57 }
 0x8c5   :  { %2228 = vmatprep.subr.bf16.mxu0 %v2350_v10 }
 0x8c7   :  { %2209 = vmatpush3.bf16.msra.mxu1 %v2208_v35 }
 0x8c8   :  { %2210 = vmatprep.subr.bf16.mxu1 %v2350_v10  ;;  %2230 = vmatpush3.bf16.msra.mxu0 %v2229_v42 }
 0x8c9   :  { %2231 = vmatprep.subr.bf16.mxu0 %v2350_v10 }
 0x8cb   :  { %2212 = vmatpush3.bf16.msra.mxu1 %v2211_v29 }
 0x8cc   :  { %2213 = vmatprep.subr.bf16.mxu1 %v2350_v10  ;;  %2233 = vmatpush3.bf16.msra.mxu0 %v2232_v30 }
 0x8cd   :  { %2234 = vmatprep.subr.bf16.mxu0 %v2350_v10 }
 0x8cf   :  { %2215 = vmatpush3.bf16.msra.mxu1 %v2214_v4 }
 0x8d0   :  { %2216 = vmatprep.subr.bf16.mxu1 %v2350_v10  ;;  %2236 = vmatpush3.bf16.msra.mxu0 %v2235_v33 }
 0x8d1   :  { %2237 = vmatprep.subr.bf16.mxu0 %v2350_v10 }
 0x8d3   :  { %2218 = vmatpush3.bf16.msra.mxu1 %v2217_v24 }
 0x8d4   :  { %2239 = vmatpush3.bf16.msra.mxu0 %v2238_v8 }
 0x8d5   :  { %2240 = vmatprep.subr.bf16.mxu0 %v2350_v10 }
 0x8d8   :  { %2242 = vmatpush3.bf16.msra.mxu0 %v2241_v18 }
 0x98e   :  { %v3442_v49 = vpop.f32.mrb[34].mxu0 }
 0x98f   :  { %1498 = vrot.lane.b32.xlu0 %v3442_v49, %s2337_s1  ;;  %1528 = vrot.lane.b32.xlu1 %v3442_v49, %s2342_s2  ;;  %v2036_v15 = vpop.f32.mrb[35].mxu0  ;;  %1496 = vst.msk [vmem:[#allocation2] sm:$0x1] %vm1495_vm12, %v3442_v49  ;;  %s2351_s1 = smov 48   ;;  %s2352_s2 = smov 32  }
 0x993   :  { %1508 = vrot.lane.b32.xlu0 %v3442_v49, %s2351_s1  ;;  %1503 = vrot.lane.b32.xlu1 %v3442_v49, %s2352_s2 }
 0x997   :  { %1518 = vrot.lane.b32.xlu0 %v3442_v49, %s2353_s6  ;;  %1513 = vrot.lane.b32.xlu1 %v3442_v49, %s2354_s18 }
 0x99b   :  { %1523 = vrot.lane.b32.xlu1 %v3442_v49, %s2355_s3 }
 0xa01   :  { %v1499_v19 = vpop.permute.xlu0 %1498  ;;  %v1529_v21 = vpop.permute.xlu1 %1528 }
 0xa02   :  { %1502 = vst.msk [vmem:[#allocation2 - $0x1] sm:$0x2] %vm1501_vm13, %v1499_v19 }
 0xa03   :  { %1533 = vst.msk [vmem:[#allocation2 + $0x1] sm:$0x1] %vm1495_vm12, %v1529_v21 }
 0xa04   :  { %1534 = vst.msk [vmem:[#allocation2] sm:$0x2] %vm1501_vm13, %v3442_v49 }
 0xa05   :  { %1535 = vst.msk [vmem:[#allocation2 - $0x1] sm:$0x4] %vm1506_vm14, %v1499_v19  ;;  %v1509_v26 = vpop.permute.xlu0 %1508  ;;  %v1504_v17 = vpop.permute.xlu1 %1503 }
 0xa06   :  { %1507 = vst.msk [vmem:[#allocation2 - $0x2] sm:$0x4] %vm1506_vm14, %v1504_v17 }
 0xa07   :  { %1536 = vst.msk [vmem:[#allocation2 - $0x2] sm:$0x8] %vm1511_vm15, %v1504_v17  ;;  %1512 = vst.msk [vmem:[#allocation2 - $0x3] sm:$0x8] %vm1511_vm15, %v1509_v26 }
 0xa08   :  { %1537 = vst.msk [vmem:[#allocation2 - $0x3] sm:$0x10] %vm1516_vm0, %v1509_v26 }
 0xa09   :  { %v1519_v10 = vpop.permute.xlu0 %1518  ;;  %v1514_v53 = vpop.permute.xlu1 %1513 }
 0xa0a   :  { %1517 = vst.msk [vmem:[#allocation2 - $0x4] sm:$0x10] %vm1516_vm0, %v1514_v53 }
 0xa0b   :  { %1538 = vst.msk [vmem:[#allocation2 - $0x4] sm:$0x20] %vm1521_vm1, %v1514_v53  ;;  %1522 = vst.msk [vmem:[#allocation2 - $0x5] sm:$0x20] %vm1521_vm1, %v1519_v10 }
 0xa0c   :  { %1539 = vst.msk [vmem:[#allocation2 - $0x5] sm:$0x40] %vm1526_vm2, %v1519_v10 }
 0xa0d   :  { %v1524_v12 = vpop.permute.xlu1 %1523 }
 0xa0e   :  { %1527 = vst.msk [vmem:[#allocation2 - $0x6] sm:$0x40] %vm1526_vm2, %v1524_v12 }
 0xa0f   :  { %1540 = vst.msk [vmem:[#allocation2 - $0x6] sm:$0x80] %vm1531_vm3, %v1524_v12  ;;  %1532 = vst.msk [vmem:[#allocation2 - $0x7] sm:$0x80] %vm1531_vm3, %v1529_v21 }
 0xa16   :  { %v1541_v20 = vld [vmem:[#allocation2] sm:$0x3] }
 0xa17   :  { %2070 = vmatmul.mubr.f32.vlgmr.msra.gmra.mrb[42].mxu1 %v1541_v20 }
 0xaea   :  { %v1631_v16 = vpop.f32.mrb[42].mxu1 }
 0xaeb   :  { %v1632_v58 = vadd.f32 %v1801_v11, %v1631_v16  ;;  %v2071_v2 = vpop.f32.mrb[43].mxu1 }
 0xaed   :  { %v1635_v27 = vmax.f32 %v1632_v58, 0.0 }
 0xaef   :  { %2105 = vmatmul.mubr.f32.vlgmr.msra.gmra.mrb[36].mxu0 %v1635_v27 }
 0xbc2   :  { %v1725_v60 = vpop.f32.mrb[36].mxu0 }
 0xbc3   :  { %v1726_v47 = vadd.f32 %v1802_v41, %v1725_v60  ;;  %v2106_v62 = vpop.f32.mrb[37].mxu0 }
 0xbc5   :  { %1729 = vst [vmem:[#allocation3] sm:$0x3] %v1726_v47 }
 0xbc6   :  { %2320 = shalt.err (!%p2317_p4)
}
 0xbc7   :  { %s2321_s28 = scalar_lea.hbm %s3558_s14, 32 }
 0xbc8   :  { %p2322_p5 = scmp.ne.s32.totalorder %s3558_s14, %s2321_s28  ;;  %p2325_p6 = scmp.lt.u32.totalorder %s2321_s28, %s3558_s14 }
 0xbca   :  { %p2327_p7 = pnand %p2325_p6, %p2322_p5 }
 0xbcc   :  { %2330 = shalt.err (!%p2327_p7)
}
 0xbcd   :  { %1739 = dma.vmem_to_hbm [thread:$0]  %s1737_s23, 32, %s3558_s14, [#allocation4]  }
 0xbce   :  { %2331 = dma.done.wait [#allocation4], 32  }
 0xbcf   :  { %2332 = vsyncadd [#allocation4], 4294967264 }
 0xbd0   :  { %1743 = vsyncpa [#allocation4], 1 }

</bundles_post_ra>
